<compile_context>
chip_gen: v5e
topology: v5e:2x2
jax: 0.10.0
libtpu: 0.0.40
codegen_flags: <defaults>
</compile_context>

<pallas_src>
import functools

import jax
import jax.numpy as jnp
from jax.experimental import pallas as pl
from jax.experimental.pallas import tpu as pltpu


def _conv3x3_rowtile_kernel(x_ref, w_ref, b_ref, o_ref, *, wp, lout):
    """One (batch, row-tile) step of the half-periodic 3x3 conv.

    x_ref: (Cin, Lin)     flattened padded rows of this tile, Lin = (th+3)*wp
    w_ref: (9, Cout, Cin) 3x3 taps, tap index k = kh*3 + kw
    b_ref: (Cout, 1)
    o_ref: (Cout, Lout)   Lout = th*wp (padded-width coords, lane-dense)
    """
    acc = jnp.dot(w_ref[0], x_ref[:, 0:lout],
                  preferred_element_type=jnp.float32)
    for k in range(1, 9):                       # static unroll over the 9 taps
        kh, kw = divmod(k, 3)
        off = kh * wp + kw                      # static lane offset of this tap
        acc = acc + jnp.dot(w_ref[k], x_ref[:, off:off + lout],
                            preferred_element_type=jnp.float32)
    o_ref[...] = (acc + b_ref[...]).astype(o_ref.dtype)


def _pick_row_tile(hu, c, wp, budget_bytes):
    """Largest divisor of hu (<=128 rows) whose double-buffered blocks fit."""
    best = 1
    for th in range(1, min(hu, 128) + 1):
        if hu % th:
            continue
        in_b = c * (th + 3) * wp * 4
        out_b = c * th * wp * 4
        if 2 * (in_b + out_b) <= budget_bytes:
            best = th
    return best


def upsample_block_2d(x_nchw, weight_oihw, bias, periodic_direction='x'):
    """Forward pass of UpSampleBlock2D.

    x_nchw:      (N, C, H, W) float32
    weight_oihw: (C, C, 3, 3) float32  (PyTorch Conv2d layout)
    bias:        (C,) float32
    returns:     (N, C, 2H, 2W) float32
    """
    N, C, H, W = x_nchw.shape
    Hu, Wu = 2 * H, 2 * W
    Wp = Wu + 2

    x = x_nchw.astype(jnp.float32)

    # --- F.interpolate(scale_factor=2.0) == nearest-neighbour 2x upsample ---
    up = jnp.repeat(jnp.repeat(x, 2, axis=2), 2, axis=3)          # (N,C,Hu,Wu)

    # --- half-periodic padding (padding_=1), same order as the PyTorch module ---
    if periodic_direction == 'x':
        xp = jnp.pad(up, ((0, 0), (0, 0), (0, 0), (1, 1)), mode='wrap')      # circ W
        xp = jnp.pad(xp, ((0, 0), (0, 0), (1, 1), (0, 0)), mode='constant')  # zero H
    elif periodic_direction == 'y':
        xp = jnp.pad(up, ((0, 0), (0, 0), (1, 1), (0, 0)), mode='wrap')      # circ H
        xp = jnp.pad(xp, ((0, 0), (0, 0), (0, 0), (1, 1)), mode='constant')  # zero W
    else:
        raise ValueError("periodic_direction must be x or y")
    # xp: (N, C, Hu+2, Wp)

    # One extra zero slack row so every tile can take (th+3) rows; it only ever
    # feeds the 2 junk columns per row that are sliced away after the kernel.
    xp = jnp.pad(xp, ((0, 0), (0, 0), (0, 1), (0, 0)), mode='constant')  # (N,C,Hu+3,Wp)

    th = _pick_row_tile(Hu, C, Wp, budget_bytes=8 * 1024 * 1024)
    assert Hu % th == 0
    T = Hu // th
    Lin = (th + 3) * Wp
    Lout = th * Wp

    # Overlapping row tiles (conv halo), flattened so the kernel sees a
    # channels-first (Cin, Lin) block with the spatial dim on lanes.
    tiles = [xp[:, :, t * th: t * th + th + 3, :] for t in range(T)]
    xt = jnp.stack(tiles, axis=1).reshape(N, T, C, Lin)           # (N,T,C,Lin)

    Cout = weight_oihw.shape[0]
    w9 = jnp.transpose(weight_oihw.astype(jnp.float32),
                       (2, 3, 0, 1)).reshape(9, Cout, C)          # (9,Cout,Cin)
    b2 = bias.astype(jnp.float32).reshape(Cout, 1)

    # explicit VMEM budget (double-buffered in/out blocks + headroom),
    # clamped well under v7x's 64 MiB physical VMEM.
    blk_bytes = 2 * (C * Lin * 4 + Cout * Lout * 4)
    vmem_limit = int(min(max(2 * blk_bytes + (4 << 20), 16 << 20), 48 << 20))

    kern = functools.partial(_conv3x3_rowtile_kernel, wp=Wp, lout=Lout)

    out_pw = pl.pallas_call(
        kern,
        out_shape=jax.ShapeDtypeStruct((N, T, Cout, Lout), x_nchw.dtype),
        grid_spec=pltpu.PrefetchScalarGridSpec(
            num_scalar_prefetch=0,
            grid=(N, T),
            in_specs=[
                pl.BlockSpec((None, None, C, Lin), lambda n, t: (n, t, 0, 0)),
                pl.BlockSpec((9, Cout, C), lambda n, t: (0, 0, 0)),
                pl.BlockSpec((Cout, 1), lambda n, t: (0, 0)),
            ],
            out_specs=pl.BlockSpec((None, None, Cout, Lout),
                                   lambda n, t: (n, t, 0, 0)),
        ),
        compiler_params=pltpu.CompilerParams(
            dimension_semantics=("parallel", "parallel"),
            vmem_limit_bytes=vmem_limit),
    )(xt, w9, b2)

    # strip the 2 junk columns per row and stitch the row tiles back together
    out = out_pw.reshape(N, T, Cout, th, Wp)[..., :Wu]            # (N,T,Cout,th,Wu)
    out = jnp.transpose(out, (0, 2, 1, 3, 4)).reshape(N, Cout, Hu, Wu)
    return out.astype(x_nchw.dtype)


def _reference(x_nchw, weight_oihw, bias, periodic_direction='x'):
    """Pure-JAX reference of the same forward pass (for validation)."""
    x = jnp.repeat(jnp.repeat(x_nchw, 2, axis=2), 2, axis=3)
    if periodic_direction == 'x':
        x = jnp.pad(x, ((0, 0), (0, 0), (0, 0), (1, 1)), mode='wrap')
        x = jnp.pad(x, ((0, 0), (0, 0), (1, 1), (0, 0)), mode='constant')
    else:
        x = jnp.pad(x, ((0, 0), (0, 0), (1, 1), (0, 0)), mode='wrap')
        x = jnp.pad(x, ((0, 0), (0, 0), (0, 1), (0, 0))[::-1][:0] or
                    ((0, 0), (0, 0), (0, 0), (1, 1)), mode='constant')
    out = jax.lax.conv_general_dilated(
        x, weight_oihw, window_strides=(1, 1), padding='VALID',
        dimension_numbers=('NCHW', 'OIHW', 'NCHW'))
    return out + bias.reshape(1, -1, 1, 1)


if __name__ == "__main__":
    key = jax.random.PRNGKey(0)
    k_x, k_w, k_b = jax.random.split(key, 3)

    N, C, H, W = 2, 4, 16, 16
    x = jax.random.normal(k_x, (N, C, H, W), dtype=jnp.float32)

    # deterministic parameter init (PyTorch Conv2d-style uniform bounds)
    fan_in = C * 3 * 3
    bound = 1.0 / (fan_in ** 0.5)
    weight = jax.random.uniform(k_w, (C, C, 3, 3), dtype=jnp.float32,
                                minval=-bound, maxval=bound)
    bias = jax.random.uniform(k_b, (C,), dtype=jnp.float32,
                              minval=-bound, maxval=bound)

    fwd = jax.jit(upsample_block_2d, static_argnames=('periodic_direction',))

    for direction in ('x', 'y'):
        out = fwd(x, weight, bias, periodic_direction=direction)
        out = jax.block_until_ready(out)
        ref = _reference(x, weight, bias, periodic_direction=direction)
        assert out.shape == (N, C, 2 * H, 2 * W), out.shape
        assert jnp.allclose(out, ref, atol=1e-4, rtol=1e-4), \
            f"mismatch vs reference (direction={direction})"

    print("KERNEL_OK")
</pallas_src>

<mosaic_0001>
module attributes {stable_mosaic.version = 11 : i64} {
  func.func @_conv3x3_rowtile_kernel(%arg0: i32, %arg1: i32, %arg2: memref<1x1x4x1190xf32, #tpu.memory_space<vmem>>, %arg3: memref<9x4x4xf32, #tpu.memory_space<vmem>>, %arg4: memref<4x1xf32, #tpu.memory_space<vmem>>, %arg5: memref<1x1x4x1088xf32, #tpu.memory_space<vmem>>) attributes {dimension_semantics = [#tpu.dimension_semantics<parallel>, #tpu.dimension_semantics<parallel>], iteration_bounds = array<i64: 2, 1>, scalar_prefetch = 0 : i64, scratch_operands = 0 : i64, tpu.core_type = #tpu.core_type<tc>, window_params = [{transform_indices = @transform_0, window_bounds = array<i64: 1, 1, 4, 1190>}, {pipeline_mode = #tpu.pipeline_mode<synchronous>, transform_indices = @transform_1, window_bounds = array<i64: 9, 4, 4>}, {pipeline_mode = #tpu.pipeline_mode<synchronous>, transform_indices = @transform_2, window_bounds = array<i64: 4, 1>}, {transform_indices = @transform_3, window_bounds = array<i64: 1, 1, 4, 1088>}]} {
    %c0 = arith.constant 0 : index
    %c0_0 = arith.constant 0 : index
    %c0_1 = arith.constant 0 : index
    %0 = vector.load %arg3[%c0, %c0_0, %c0_1] : memref<9x4x4xf32, #tpu.memory_space<vmem>>, vector<1x4x4xf32>
    %1 = vector.shape_cast %0 : vector<1x4x4xf32> to vector<4x4xf32>
    %c0_2 = arith.constant 0 : index
    %c0_3 = arith.constant 0 : index
    %c0_4 = arith.constant 0 : index
    %c0_5 = arith.constant 0 : index
    %2 = vector.load %arg2[%c0_2, %c0_3, %c0_4, %c0_5] : memref<1x1x4x1190xf32, #tpu.memory_space<vmem>>, vector<1x1x4x1088xf32>
    %3 = vector.shape_cast %2 : vector<1x1x4x1088xf32> to vector<4x1088xf32>
    %cst = arith.constant dense<0.000000e+00> : vector<4x1088xf32>
    %4 = tpu.matmul %1, %3, %cst {dimension_numbers = #tpu.dot_dimension_numbers<[1], [0], [0], [1], [0, 0, 1, 1], [], []>} : vector<4x4xf32>, vector<4x1088xf32>, vector<4x1088xf32> -> vector<4x1088xf32>
    %c1 = arith.constant 1 : index
    %c0_6 = arith.constant 0 : index
    %c0_7 = arith.constant 0 : index
    %5 = vector.load %arg3[%c1, %c0_6, %c0_7] : memref<9x4x4xf32, #tpu.memory_space<vmem>>, vector<1x4x4xf32>
    %6 = vector.shape_cast %5 : vector<1x4x4xf32> to vector<4x4xf32>
    %c0_8 = arith.constant 0 : index
    %c0_9 = arith.constant 0 : index
    %c0_10 = arith.constant 0 : index
    %c1_11 = arith.constant 1 : index
    %7 = vector.load %arg2[%c0_8, %c0_9, %c0_10, %c1_11] : memref<1x1x4x1190xf32, #tpu.memory_space<vmem>>, vector<1x1x4x1088xf32>
    %8 = vector.shape_cast %7 : vector<1x1x4x1088xf32> to vector<4x1088xf32>
    %cst_12 = arith.constant dense<0.000000e+00> : vector<4x1088xf32>
    %9 = tpu.matmul %6, %8, %cst_12 {dimension_numbers = #tpu.dot_dimension_numbers<[1], [0], [0], [1], [0, 0, 1, 1], [], []>} : vector<4x4xf32>, vector<4x1088xf32>, vector<4x1088xf32> -> vector<4x1088xf32>
    %10 = arith.addf %4, %9 : vector<4x1088xf32>
    %c2 = arith.constant 2 : index
    %c0_13 = arith.constant 0 : index
    %c0_14 = arith.constant 0 : index
    %11 = vector.load %arg3[%c2, %c0_13, %c0_14] : memref<9x4x4xf32, #tpu.memory_space<vmem>>, vector<1x4x4xf32>
    %12 = vector.shape_cast %11 : vector<1x4x4xf32> to vector<4x4xf32>
    %c0_15 = arith.constant 0 : index
    %c0_16 = arith.constant 0 : index
    %c0_17 = arith.constant 0 : index
    %c2_18 = arith.constant 2 : index
    %13 = vector.load %arg2[%c0_15, %c0_16, %c0_17, %c2_18] : memref<1x1x4x1190xf32, #tpu.memory_space<vmem>>, vector<1x1x4x1088xf32>
    %14 = vector.shape_cast %13 : vector<1x1x4x1088xf32> to vector<4x1088xf32>
    %cst_19 = arith.constant dense<0.000000e+00> : vector<4x1088xf32>
    %15 = tpu.matmul %12, %14, %cst_19 {dimension_numbers = #tpu.dot_dimension_numbers<[1], [0], [0], [1], [0, 0, 1, 1], [], []>} : vector<4x4xf32>, vector<4x1088xf32>, vector<4x1088xf32> -> vector<4x1088xf32>
    %16 = arith.addf %10, %15 : vector<4x1088xf32>
    %c3 = arith.constant 3 : index
    %c0_20 = arith.constant 0 : index
    %c0_21 = arith.constant 0 : index
    %17 = vector.load %arg3[%c3, %c0_20, %c0_21] : memref<9x4x4xf32, #tpu.memory_space<vmem>>, vector<1x4x4xf32>
    %18 = vector.shape_cast %17 : vector<1x4x4xf32> to vector<4x4xf32>
    %c0_22 = arith.constant 0 : index
    %c0_23 = arith.constant 0 : index
    %c0_24 = arith.constant 0 : index
    %c34 = arith.constant 34 : index
    %19 = vector.load %arg2[%c0_22, %c0_23, %c0_24, %c34] : memref<1x1x4x1190xf32, #tpu.memory_space<vmem>>, vector<1x1x4x1088xf32>
    %20 = vector.shape_cast %19 : vector<1x1x4x1088xf32> to vector<4x1088xf32>
    %cst_25 = arith.constant dense<0.000000e+00> : vector<4x1088xf32>
    %21 = tpu.matmul %18, %20, %cst_25 {dimension_numbers = #tpu.dot_dimension_numbers<[1], [0], [0], [1], [0, 0, 1, 1], [], []>} : vector<4x4xf32>, vector<4x1088xf32>, vector<4x1088xf32> -> vector<4x1088xf32>
    %22 = arith.addf %16, %21 : vector<4x1088xf32>
    %c4 = arith.constant 4 : index
    %c0_26 = arith.constant 0 : index
    %c0_27 = arith.constant 0 : index
    %23 = vector.load %arg3[%c4, %c0_26, %c0_27] : memref<9x4x4xf32, #tpu.memory_space<vmem>>, vector<1x4x4xf32>
    %24 = vector.shape_cast %23 : vector<1x4x4xf32> to vector<4x4xf32>
    %c0_28 = arith.constant 0 : index
    %c0_29 = arith.constant 0 : index
    %c0_30 = arith.constant 0 : index
    %c35 = arith.constant 35 : index
    %25 = vector.load %arg2[%c0_28, %c0_29, %c0_30, %c35] : memref<1x1x4x1190xf32, #tpu.memory_space<vmem>>, vector<1x1x4x1088xf32>
    %26 = vector.shape_cast %25 : vector<1x1x4x1088xf32> to vector<4x1088xf32>
    %cst_31 = arith.constant dense<0.000000e+00> : vector<4x1088xf32>
    %27 = tpu.matmul %24, %26, %cst_31 {dimension_numbers = #tpu.dot_dimension_numbers<[1], [0], [0], [1], [0, 0, 1, 1], [], []>} : vector<4x4xf32>, vector<4x1088xf32>, vector<4x1088xf32> -> vector<4x1088xf32>
    %28 = arith.addf %22, %27 : vector<4x1088xf32>
    %c5 = arith.constant 5 : index
    %c0_32 = arith.constant 0 : index
    %c0_33 = arith.constant 0 : index
    %29 = vector.load %arg3[%c5, %c0_32, %c0_33] : memref<9x4x4xf32, #tpu.memory_space<vmem>>, vector<1x4x4xf32>
    %30 = vector.shape_cast %29 : vector<1x4x4xf32> to vector<4x4xf32>
    %c0_34 = arith.constant 0 : index
    %c0_35 = arith.constant 0 : index
    %c0_36 = arith.constant 0 : index
    %c36 = arith.constant 36 : index
    %31 = vector.load %arg2[%c0_34, %c0_35, %c0_36, %c36] : memref<1x1x4x1190xf32, #tpu.memory_space<vmem>>, vector<1x1x4x1088xf32>
    %32 = vector.shape_cast %31 : vector<1x1x4x1088xf32> to vector<4x1088xf32>
    %cst_37 = arith.constant dense<0.000000e+00> : vector<4x1088xf32>
    %33 = tpu.matmul %30, %32, %cst_37 {dimension_numbers = #tpu.dot_dimension_numbers<[1], [0], [0], [1], [0, 0, 1, 1], [], []>} : vector<4x4xf32>, vector<4x1088xf32>, vector<4x1088xf32> -> vector<4x1088xf32>
    %34 = arith.addf %28, %33 : vector<4x1088xf32>
    %c6 = arith.constant 6 : index
    %c0_38 = arith.constant 0 : index
    %c0_39 = arith.constant 0 : index
    %35 = vector.load %arg3[%c6, %c0_38, %c0_39] : memref<9x4x4xf32, #tpu.memory_space<vmem>>, vector<1x4x4xf32>
    %36 = vector.shape_cast %35 : vector<1x4x4xf32> to vector<4x4xf32>
    %c0_40 = arith.constant 0 : index
    %c0_41 = arith.constant 0 : index
    %c0_42 = arith.constant 0 : index
    %c68 = arith.constant 68 : index
    %37 = vector.load %arg2[%c0_40, %c0_41, %c0_42, %c68] : memref<1x1x4x1190xf32, #tpu.memory_space<vmem>>, vector<1x1x4x1088xf32>
    %38 = vector.shape_cast %37 : vector<1x1x4x1088xf32> to vector<4x1088xf32>
    %cst_43 = arith.constant dense<0.000000e+00> : vector<4x1088xf32>
    %39 = tpu.matmul %36, %38, %cst_43 {dimension_numbers = #tpu.dot_dimension_numbers<[1], [0], [0], [1], [0, 0, 1, 1], [], []>} : vector<4x4xf32>, vector<4x1088xf32>, vector<4x1088xf32> -> vector<4x1088xf32>
    %40 = arith.addf %34, %39 : vector<4x1088xf32>
    %c7 = arith.constant 7 : index
    %c0_44 = arith.constant 0 : index
    %c0_45 = arith.constant 0 : index
    %41 = vector.load %arg3[%c7, %c0_44, %c0_45] : memref<9x4x4xf32, #tpu.memory_space<vmem>>, vector<1x4x4xf32>
    %42 = vector.shape_cast %41 : vector<1x4x4xf32> to vector<4x4xf32>
    %c0_46 = arith.constant 0 : index
    %c0_47 = arith.constant 0 : index
    %c0_48 = arith.constant 0 : index
    %c69 = arith.constant 69 : index
    %43 = vector.load %arg2[%c0_46, %c0_47, %c0_48, %c69] : memref<1x1x4x1190xf32, #tpu.memory_space<vmem>>, vector<1x1x4x1088xf32>
    %44 = vector.shape_cast %43 : vector<1x1x4x1088xf32> to vector<4x1088xf32>
    %cst_49 = arith.constant dense<0.000000e+00> : vector<4x1088xf32>
    %45 = tpu.matmul %42, %44, %cst_49 {dimension_numbers = #tpu.dot_dimension_numbers<[1], [0], [0], [1], [0, 0, 1, 1], [], []>} : vector<4x4xf32>, vector<4x1088xf32>, vector<4x1088xf32> -> vector<4x1088xf32>
    %46 = arith.addf %40, %45 : vector<4x1088xf32>
    %c8 = arith.constant 8 : index
    %c0_50 = arith.constant 0 : index
    %c0_51 = arith.constant 0 : index
    %47 = vector.load %arg3[%c8, %c0_50, %c0_51] : memref<9x4x4xf32, #tpu.memory_space<vmem>>, vector<1x4x4xf32>
    %48 = vector.shape_cast %47 : vector<1x4x4xf32> to vector<4x4xf32>
    %c0_52 = arith.constant 0 : index
    %c0_53 = arith.constant 0 : index
    %c0_54 = arith.constant 0 : index
    %c70 = arith.constant 70 : index
    %49 = vector.load %arg2[%c0_52, %c0_53, %c0_54, %c70] : memref<1x1x4x1190xf32, #tpu.memory_space<vmem>>, vector<1x1x4x1088xf32>
    %50 = vector.shape_cast %49 : vector<1x1x4x1088xf32> to vector<4x1088xf32>
    %cst_55 = arith.constant dense<0.000000e+00> : vector<4x1088xf32>
    %51 = tpu.matmul %48, %50, %cst_55 {dimension_numbers = #tpu.dot_dimension_numbers<[1], [0], [0], [1], [0, 0, 1, 1], [], []>} : vector<4x4xf32>, vector<4x1088xf32>, vector<4x1088xf32> -> vector<4x1088xf32>
    %52 = arith.addf %46, %51 : vector<4x1088xf32>
    %c0_56 = arith.constant 0 : index
    %c0_57 = arith.constant 0 : index
    %53 = vector.load %arg4[%c0_56, %c0_57] : memref<4x1xf32, #tpu.memory_space<vmem>>, vector<4x1xf32>
    %54 = vector.broadcast %53 : vector<4x1xf32> to vector<4x1088xf32>
    %55 = arith.addf %52, %54 : vector<4x1088xf32>
    %c0_58 = arith.constant 0 : index
    %c0_59 = arith.constant 0 : index
    %c0_60 = arith.constant 0 : index
    %c0_61 = arith.constant 0 : index
    %56 = vector.load %arg5[%c0_58, %c0_59, %c0_60, %c0_61] : memref<1x1x4x1088xf32, #tpu.memory_space<vmem>>, vector<1x1x4x1088xf32>
    %57 = vector.shape_cast %56 : vector<1x1x4x1088xf32> to vector<4x1088xf32>
    %58 = vector.shape_cast %55 : vector<4x1088xf32> to vector<1x1x4x1088xf32>
    tpu.vector_store %arg5[%c0_58, %c0_59, %c0_60, %c0_61], %58 {strides = array<i32>} : memref<1x1x4x1088xf32, #tpu.memory_space<vmem>>, vector<1x1x4x1088xf32>,
    return
  }
  func.func @transform_0(%arg0: i32, %arg1: i32) -> (i32, i32, i32, i32) {
    %c0_i32 = arith.constant 0 : i32
    %c0_i32_0 = arith.constant 0 : i32
    %c0_i32_1 = arith.constant 0 : i32
    return %arg0, %arg1, %c0_i32, %c0_i32_0 : i32, i32, i32, i32
  }
  func.func @transform_1(%arg0: i32, %arg1: i32) -> (i32, i32, i32) {
    %c0_i32 = arith.constant 0 : i32
    %c0_i32_0 = arith.constant 0 : i32
    %c0_i32_1 = arith.constant 0 : i32
    %c0_i32_2 = arith.constant 0 : i32
    return %c0_i32, %c0_i32_0, %c0_i32_1 : i32, i32, i32
  }
  func.func @transform_2(%arg0: i32, %arg1: i32) -> (i32, i32) {
    %c0_i32 = arith.constant 0 : i32
    %c0_i32_0 = arith.constant 0 : i32
    %c0_i32_1 = arith.constant 0 : i32
    return %c0_i32, %c0_i32_0 : i32, i32
  }
  func.func @transform_3(%arg0: i32, %arg1: i32) -> (i32, i32, i32, i32) {
    %c0_i32 = arith.constant 0 : i32
    %c0_i32_0 = arith.constant 0 : i32
    %c0_i32_1 = arith.constant 0 : i32
    return %arg0, %arg1, %c0_i32, %c0_i32_0 : i32, i32, i32, i32
  }
}

</mosaic_0001>

<bundles_post_ra>
// kernel: upsample_block_2d.1
= control target key start
LH: loop header
LB: loop body
LE: loop exit
PB: predicated region body
PF: predicated region fallthrough
CT: control target
= control target key end

     0   :  { %s2960_s12 = smov 0   ;;  %s2962_s13 = smov 0   ;;  %s3535_s0 = inlined_call_operand.vmem [shape: f32[2,1,4,1190], index: 0, kind: input, shape index: {}]   ;;  %s3536_s1 = inlined_call_operand.vmem [shape: f32[9,4,4], index: 1, kind: input, shape index: {}]   ;;  %s3537_s2 = inlined_call_operand.vmem [shape: f32[4,1], index: 2, kind: input, shape index: {}]   ;;  %s3538_s3 = inlined_call_operand.vmem [shape: f32[2,1,4,1088], index: 3, kind: output, shape index: {}]  }
   0x1   :  { %s2964_s14 = smov 0  }
   0x2 LB: > { %s25_s15 = sadd.s32 1, %s2925_s13  ;;  %p2696_p0 = scmp.ge.s32.totalorder %s2929_s14, 1  ;;  %s2929_s14 = sphi %s2964_s14, %s13_s14   ;;  %s2925_s13 = sphi %s2962_s13, %s3540_s13   ;;  %s2921_s12 = sphi %s2960_s12, %s3539_s12  }
   0x3   : > { %p27_p1 = scmp.ge.s32.totalorder %s25_s15, 2  ;;  %p157_p2 = scmp.lt.s32.totalorder %s2929_s14, 3 }
   0x5   : > { %s3542_s15 = smov (%p27_p1, %s25_s15), 0  ;;  %p158_p3 = pnand %p2696_p0, %p157_p2 }
   0x6   : > { %p189_p4 = scmp.lt.s32.totalorder (!%p158_p3), %s2921_s12, 1  ;;  %s2931_s20 = smov (!%p158_p3), 127  }
   0x7   : > { %161 = sbr.rel (%p158_p3) target bundleno = 474 (0x1da), region = 32  ;;  %s2932_s21 = smov (!%p158_p3), 126  }
   0x8   : > { %s2933_s22 = smov (!%p158_p3), 94   ;;  %s2934_s23 = smov (!%p158_p3), 93  }
   0x9   : > { %s2935_s24 = smov (!%p158_p3), 92   ;;  %s2936_s25 = smov (!%p158_p3), 60  }
   0xa   : > { %s2937_s28 = smov (!%p158_p3), 59   ;;  %s2938_s6 = smov (!%p158_p3), 58  }
   0xc   : > { %s3544_s12 = smov (!%p189_p4, %s2921_s12), 1  ;;  %vm255_vm0 = vcmask 1039360   ;;  %vm268_vm1 = vcmask 1043456   ;;  %vm264_vm2 = vcmask 31744   ;;  %vm732_vm3 = vcmask 1031168  }
   0xd   : > { %s2871_s16 = smul.u32 40, %s3544_s12  ;;  %vm998_vm4 = vcmask 769024   ;;  %vm1264_vm5 = vcmask 760832   ;;  %vm1530_vm6 = vcmask 752640   ;;  %vm1799_vm7 = vcmask 490496  }
   0xe   : > { %vm2069_vm8 = vcmask 482304   ;;  %vm2339_vm9 = vcmask 474112   ;;  %vm2598_vm10 = vcmask 519168  }
   0xf   : > { %s2984_s19 = scalar_lea.vmem %s3535_s0, %s2871_s16 }
  0x10   : > { %v2987_v0 = vld [vmem:[%s2984_s19 + $0x8] sm:$0xff]  ;;  %v2990_v1 = vld [vmem:[%s2984_s19] sm:$0xff]  ;;  %v2993_v2 = vld [vmem:[%s2984_s19 + $0x10] sm:$0xff] }
  0x11   : > { %222 = vst [vmem:[#allocation1 + $0x10] ss:$2 sm:$0xff] %v2987_v0  ;;  %v2997_v3 = vld [vmem:[%s2984_s19 + $0x18] sm:$0xff]  ;;  %v212_v6 = vld [vmem:[%s2984_s19 + $0x20] sm:$0xf] }
  0x12   : > { %220 = vst [vmem:[#allocation1] ss:$2 sm:$0xff] %v2990_v1  ;;  %v691_v35 = vld [vmem:[%s2984_s19 + $0x20] sm:$0xf] }
  0x13   : > { %224 = vst [vmem:[#allocation1 + $0x20] ss:$2 sm:$0xff] %v2993_v2  ;;  %v957_v43 = vld [vmem:[%s2984_s19 + $0x20] sm:$0xf] }
  0x14   : > { %226 = vst [vmem:[#allocation1 + $0x30] ss:$2 sm:$0xff] %v2997_v3  ;;  %v1223_v51 = vld [vmem:[%s2984_s19 + $0x20] sm:$0xf] }
  0x15   : > { %v1489_v59 = vld [vmem:[%s2984_s19 + $0x20] sm:$0xf] }
  0x18   : > { %v230_v4 = vld.sshfl [vmem:[#allocation1 + $0x18] sm:$0xff pattern:$0x75316420]  ;;  %v229_v5 = vld.sshfl [vmem:[#allocation1 + $0x10] sm:$0xff pattern:$0x75316420] }
  0x19   : > { %243 = vrot.lane.b32.xlu0 %v230_v4, %s2931_s20  ;;  %v227_v7 = vld.sshfl [vmem:[#allocation1] sm:$0xff pattern:$0x75316420]  ;;  %241 = vrot.lane.b32.xlu2 %v229_v5, %s2931_s20  ;;  %469 = vst [vmem:[#allocation1 + $0x10] ss:$2 sm:$0xff] %v2987_v0 }
  0x1a   : > { %237 = vrot.lane.b32.xlu1 %v227_v7, %s2931_s20  ;;  %v231_v8 = vld.sshfl [vmem:[#allocation1 + $0x20] sm:$0xff pattern:$0x75316420]  ;;  %v228_v9 = vld.sshfl [vmem:[#allocation1 + $0x8] sm:$0xff pattern:$0x75316420] }
  0x1b   : > { %v232_v10 = vld.sshfl [vmem:[#allocation1 + $0x28] sm:$0xff pattern:$0x75316420]  ;;  %v233_v11 = vld.sshfl [vmem:[#allocation1 + $0x30] sm:$0xff pattern:$0x75316420] }
  0x1c   : > { %471 = vst [vmem:[#allocation1 + $0x20] ss:$2 sm:$0xff] %v2993_v2  ;;  %v234_v12 = vld.sshfl [vmem:[#allocation1 + $0x38] sm:$0xff pattern:$0x75316420]  ;;  %v3091_v5 = vld [vmem:[%s2984_s19 + $0x20] sm:$0xff] }
  0x1d   : > { %235 = vst [vmem:[#allocation1] ss:$2 sm:$0xff] %v212_v6 }
  0x1e   : > { %473 = vst [vmem:[#allocation1 + $0x30] ss:$2 sm:$0xff] %v2997_v3 }
  0x20   : > { %v3009_v13 = vld.sshfl [vmem:[#allocation1 + $0x10] sm:$0xff pattern:$0x75316420]  ;;  %v3011_v14 = vld.sshfl [vmem:[#allocation1 + $0x18] sm:$0xff pattern:$0x75316420] }
  0x21   : > { %699 = vst [vmem:[#allocation1 + $0x10] ss:$2 sm:$0xff] %v2987_v0  ;;  %245 = vrot.lane.b32.xlu0 %v231_v8, %s2931_s20  ;;  %251 = vrot.lane.b32.xlu2 %v234_v12, %s2931_s20 }
  0x22   : > { %239 = vrot.lane.b32.xlu1 %v228_v9, %s2931_s20 }
  0x23   : > { %v3017_v15 = vld.sshfl [vmem:[#allocation1 + $0x20] sm:$0xff pattern:$0x75316420]  ;;  %v3019_v16 = vld.sshfl [vmem:[#allocation1 + $0x28] sm:$0xff pattern:$0x75316420] }
  0x24   : > { %701 = vst [vmem:[#allocation1 + $0x20] ss:$2 sm:$0xff] %v2993_v2  ;;  %v236_v17 = vld.sshfl [vmem:[#allocation1] sm:$0xff pattern:$0x75316420] }
  0x25   : > { %467 = vst [vmem:[#allocation1] ss:$2 sm:$0xff] %v2990_v1  ;;  %v3023_v18 = vld.sshfl [vmem:[#allocation1 + $0x30] sm:$0xff pattern:$0x75316420] }
  0x26   : > { %v3025_v19 = vld.sshfl [vmem:[#allocation1 + $0x38] sm:$0xff pattern:$0x75316420] }
  0x27   : > { %703 = vst [vmem:[#allocation1 + $0x30] ss:$2 sm:$0xff] %v2997_v3 }
  0x28   : > { %v706_v20 = vld.sshfl [vmem:[#allocation1 + $0x10] sm:$0xff pattern:$0x75316420]  ;;  %v707_v21 = vld.sshfl [vmem:[#allocation1 + $0x18] sm:$0xff pattern:$0x75316420] }
  0x29   : > { %253 = vrot.lane.b32.xlu0 %v236_v17, %s2931_s20  ;;  %249 = vrot.lane.b32.xlu2 %v233_v11, %s2931_s20  ;;  %965 = vst [vmem:[#allocation1 + $0x10] ss:$2 sm:$0xff] %v2987_v0 }
  0x2a   : > { %247 = vrot.lane.b32.xlu1 %v232_v10, %s2931_s20 }
  0x2b   : > { %v709_v22 = vld.sshfl [vmem:[#allocation1 + $0x28] sm:$0xff pattern:$0x75316420]  ;;  %v708_v23 = vld.sshfl [vmem:[#allocation1 + $0x20] sm:$0xff pattern:$0x75316420] }
  0x2c   : > { %967 = vst [vmem:[#allocation1 + $0x20] ss:$2 sm:$0xff] %v2993_v2  ;;  %v3033_v24 = vld.sshfl [vmem:[#allocation1] sm:$0xff pattern:$0x75316420] }
  0x2d   : > { %v3036_v27 = vld.sshfl [vmem:[#allocation1 + $0x8] sm:$0xff pattern:$0x75316420] }
  0x2e   : > { %v710_v25 = vld.sshfl [vmem:[#allocation1 + $0x30] sm:$0xff pattern:$0x75316420]  ;;  %v711_v26 = vld.sshfl [vmem:[#allocation1 + $0x38] sm:$0xff pattern:$0x75316420] }
  0x2f   : > { %969 = vst [vmem:[#allocation1 + $0x30] ss:$2 sm:$0xff] %v2997_v3 }
  0x30   : > { %v972_v28 = vld.sshfl [vmem:[#allocation1 + $0x10] sm:$0xff pattern:$0x75316420]  ;;  %v973_v29 = vld.sshfl [vmem:[#allocation1 + $0x18] sm:$0xff pattern:$0x75316420] }
  0x31   : > { %724 = vrot.lane.b32.xlu0 %v709_v22, %s2932_s21  ;;  %720 = vrot.lane.b32.xlu2 %v707_v21, %s2932_s21  ;;  %1231 = vst [vmem:[#allocation1 + $0x10] ss:$2 sm:$0xff] %v2987_v0 }
  0x32   : > { %718 = vrot.lane.b32.xlu1 %v706_v20, %s2932_s21  ;;  %482 = vst [vmem:[#allocation1] ss:$2 sm:$0xff] %v212_v6 }
  0x33   : > { %v974_v30 = vld.sshfl [vmem:[#allocation1 + $0x20] sm:$0xff pattern:$0x75316420]  ;;  %v975_v31 = vld.sshfl [vmem:[#allocation1 + $0x28] sm:$0xff pattern:$0x75316420] }
  0x34   : > { %1233 = vst [vmem:[#allocation1 + $0x20] ss:$2 sm:$0xff] %v2993_v2 }
  0x36   : > { %v977_v32 = vld.sshfl [vmem:[#allocation1 + $0x38] sm:$0xff pattern:$0x75316420]  ;;  %v976_v33 = vld.sshfl [vmem:[#allocation1 + $0x30] sm:$0xff pattern:$0x75316420] }
  0x37   : > { %1235 = vst [vmem:[#allocation1 + $0x30] ss:$2 sm:$0xff] %v2997_v3 }
  0x38   : > { %v1239_v36 = vld.sshfl [vmem:[#allocation1 + $0x18] sm:$0xff pattern:$0x75316420]  ;;  %v1238_v39 = vld.sshfl [vmem:[#allocation1 + $0x10] sm:$0xff pattern:$0x75316420] }
  0x39   : > { %722 = vrot.lane.b32.xlu0 %v708_v23, %s2932_s21  ;;  %988 = vrot.lane.b32.xlu2 %v974_v30, %s2933_s22  ;;  %v3046_v34 = vld.sshfl [vmem:[#allocation1] sm:$0xff pattern:$0x75316420]  ;;  %1497 = vst [vmem:[#allocation1 + $0x10] ss:$2 sm:$0xff] %v2987_v0 }
  0x3a   : > { %726 = vrot.lane.b32.xlu1 %v710_v25, %s2932_s21  ;;  %697 = vst [vmem:[#allocation1] ss:$2 sm:$0xff] %v2990_v1  ;;  %v3124_v30 = vld [vmem:[%s3536_s1 + $0x4] sm:$0xf] }
  0x3b   : > { %v1240_v40 = vld.sshfl [vmem:[#allocation1 + $0x20] sm:$0xff pattern:$0x75316420]  ;;  %v1241_v42 = vld.sshfl [vmem:[#allocation1 + $0x28] sm:$0xff pattern:$0x75316420] }
  0x3c   : > { %1499 = vst [vmem:[#allocation1 + $0x20] ss:$2 sm:$0xff] %v2993_v2 }
  0x3e   : > { %v1243_v46 = vld.sshfl [vmem:[#allocation1 + $0x38] sm:$0xff pattern:$0x75316420]  ;;  %v1242_v49 = vld.sshfl [vmem:[#allocation1 + $0x30] sm:$0xff pattern:$0x75316420] }
  0x3f   : > { %1501 = vst [vmem:[#allocation1 + $0x30] ss:$2 sm:$0xff] %v2997_v3 }
  0x40   : > { %v1505_v48 = vld.sshfl [vmem:[#allocation1 + $0x18] sm:$0xff pattern:$0x75316420]  ;;  %v1504_v50 = vld.sshfl [vmem:[#allocation1 + $0x10] sm:$0xff pattern:$0x75316420] }
  0x41   : > { %728 = vrot.lane.b32.xlu0 %v711_v26, %s2932_s21  ;;  %986 = vrot.lane.b32.xlu2 %v973_v29, %s2933_s22  ;;  %v705_v37 = vld.sshfl [vmem:[#allocation1 + $0x8] sm:$0xff pattern:$0x75316420]  ;;  %v704_v38 = vld.sshfl [vmem:[#allocation1] sm:$0xff pattern:$0x75316420] }
  0x42   : > { %984 = vrot.lane.b32.xlu1 %v972_v28, %s2933_s22  ;;  %712 = vst [vmem:[#allocation1] ss:$2 sm:$0xff] %v691_v35 }
  0x43   : > { %1763 = vst [vmem:[#allocation1 + $0x10] ss:$2 sm:$0xff] %v2987_v0  ;;  %v1507_v55 = vld.sshfl [vmem:[#allocation1 + $0x28] sm:$0xff pattern:$0x75316420] }
  0x44   : > { %v1506_v56 = vld.sshfl [vmem:[#allocation1 + $0x20] sm:$0xff pattern:$0x75316420] }
  0x45   : > { %1765 = vst [vmem:[#allocation1 + $0x20] ss:$2 sm:$0xff] %v2993_v2 }
  0x46   : > { %v1508_v57 = vld.sshfl [vmem:[#allocation1 + $0x30] sm:$0xff pattern:$0x75316420]  ;;  %v1509_v58 = vld.sshfl [vmem:[#allocation1 + $0x38] sm:$0xff pattern:$0x75316420] }
  0x47   : > { %1767 = vst [vmem:[#allocation1 + $0x30] ss:$2 sm:$0xff] %v2997_v3 }
  0x49   : > { %716 = vrot.lane.b32.xlu0 %v705_v37, %s2932_s21  ;;  %714 = vrot.lane.b32.xlu2 %v704_v38, %s2932_s21  ;;  %v713_v41 = vld.sshfl [vmem:[#allocation1] sm:$0xff pattern:$0x75316420] }
  0x4a   : > { %1254 = vrot.lane.b32.xlu1 %v1240_v40, %s2934_s23  ;;  %963 = vst [vmem:[#allocation1] ss:$2 sm:$0xff] %v2990_v1  ;;  %v1770_v11 = vld.sshfl [vmem:[#allocation1 + $0x10] sm:$0xff pattern:$0x75316420] }
  0x4b   : > { %v1771_v12 = vld.sshfl [vmem:[#allocation1 + $0x18] sm:$0xff pattern:$0x75316420] }
  0x4c   : > { %v1773_v6 = vld.sshfl [vmem:[#allocation1 + $0x28] sm:$0xff pattern:$0x75316420]  ;;  %v3097_v9 = vld.sshfl [vmem:[#allocation1 + $0x20] sm:$0xff pattern:$0x75316420] }
  0x4d   : > { %2035 = vst [vmem:[#allocation1 + $0x20] ss:$2 sm:$0xff] %v2993_v2 }
  0x4e   : > { %v1774_v17 = vld.sshfl [vmem:[#allocation1 + $0x30] sm:$0xff pattern:$0x75316420]  ;;  %2033 = vst [vmem:[#allocation1 + $0x10] ss:$2 sm:$0xff] %v2987_v0 }
  0x4f   : > { %v3111_v22 = vld.sshfl [vmem:[#allocation1 + $0x38] sm:$0xff pattern:$0x75316420] }
  0x50   : > { %2037 = vst [vmem:[#allocation1 + $0x30] ss:$2 sm:$0xff] %v2997_v3 }
  0x51   : > { %990 = vrot.lane.b32.xlu0 %v975_v31, %s2933_s22  ;;  %994 = vrot.lane.b32.xlu2 %v977_v32, %s2933_s22  ;;  %v970_v44 = vld.sshfl [vmem:[#allocation1] sm:$0xff pattern:$0x75316420]  ;;  %v971_v45 = vld.sshfl [vmem:[#allocation1 + $0x8] sm:$0xff pattern:$0x75316420] }
  0x52   : > { %730 = vrot.lane.b32.xlu1 %v713_v41, %s2932_s21  ;;  %978 = vst [vmem:[#allocation1] ss:$2 sm:$0xff] %v957_v43 }
  0x54   : > { %v3131_v31 = vld.sshfl [vmem:[#allocation1 + $0x20] sm:$0xff pattern:$0x75316420]  ;;  %v3136_v35 = vld.sshfl [vmem:[#allocation1 + $0x28] sm:$0xff pattern:$0x75316420] }
  0x55   : > { %2305 = vst [vmem:[#allocation1 + $0x20] ss:$2 sm:$0xff] %v2993_v2 }
  0x59   : > { %992 = vrot.lane.b32.xlu0 %v976_v33, %s2933_s22  ;;  %982 = vrot.lane.b32.xlu2 %v971_v45, %s2933_s22  ;;  %v979_v47 = vld.sshfl [vmem:[#allocation1] sm:$0xff pattern:$0x75316420] }
  0x5a   : > { %980 = vrot.lane.b32.xlu1 %v970_v44, %s2933_s22  ;;  %1229 = vst [vmem:[#allocation1] ss:$2 sm:$0xff] %v2990_v1 }
  0x61   : > { %1252 = vrot.lane.b32.xlu0 %v1239_v36, %s2934_s23  ;;  %v1237_v52 = vld.sshfl [vmem:[#allocation1 + $0x8] sm:$0xff pattern:$0x75316420]  ;;  %v1236_v53 = vld.sshfl [vmem:[#allocation1] sm:$0xff pattern:$0x75316420]  ;;  %1260 = vrot.lane.b32.xlu2 %v1243_v46, %s2934_s23 }
  0x62   : > { %996 = vrot.lane.b32.xlu1 %v979_v47, %s2933_s22  ;;  %1244 = vst [vmem:[#allocation1] ss:$2 sm:$0xff] %v1223_v51  ;;  %v207_v51 = vld [vmem:[%s3536_s1] sm:$0xf] }
  0x69   : > { %1248 = vrot.lane.b32.xlu0 %v1237_v52, %s2934_s23  ;;  %v1245_v54 = vld.sshfl [vmem:[#allocation1] sm:$0xff pattern:$0x75316420]  ;;  %1246 = vrot.lane.b32.xlu2 %v1236_v53, %s2934_s23 }
  0x6a   : > { %1250 = vrot.lane.b32.xlu1 %v1238_v39, %s2934_s23  ;;  %1495 = vst [vmem:[#allocation1] ss:$2 sm:$0xff] %v2990_v1 }
  0x71   : > { %1262 = vrot.lane.b32.xlu0 %v1245_v54, %s2934_s23  ;;  %1258 = vrot.lane.b32.xlu2 %v1242_v49, %s2934_s23  ;;  %v1502_v60 = vld.sshfl [vmem:[#allocation1] sm:$0xff pattern:$0x75316420]  ;;  %v1503_v61 = vld.sshfl [vmem:[#allocation1 + $0x8] sm:$0xff pattern:$0x75316420] }
  0x72   : > { %1256 = vrot.lane.b32.xlu1 %v1241_v42, %s2934_s23  ;;  %1510 = vst [vmem:[#allocation1] ss:$2 sm:$0xff] %v1489_v59  ;;  %v3192_v49 = vld.sshfl [vmem:[#allocation1 + $0x38] sm:$0xff pattern:$0x75316420] }
  0x73   : > { %v242_v62 = vpop.permute.xlu2 %241 }
  0x79   : > { %1516 = vrot.lane.b32.xlu0 %v1504_v50, %s2935_s24  ;;  %1514 = vrot.lane.b32.xlu2 %v1503_v61, %s2935_s24  ;;  %v1511_v63 = vld.sshfl [vmem:[#allocation1] sm:$0xff pattern:$0x75316420] }
  0x7a   : > { %1518 = vrot.lane.b32.xlu1 %v1505_v48, %s2935_s24  ;;  %1761 = vst [vmem:[#allocation1] ss:$2 sm:$0xff] %v2990_v1  ;;  %v3187_v48 = vld.sshfl [vmem:[#allocation1 + $0x30] sm:$0xff pattern:$0x75316420] }
  0x7b   : > { %v3088_v4 = vpop.permute.xlu2 %251  ;;  %2307 = vst [vmem:[#allocation1 + $0x30] ss:$2 sm:$0xff] %v2997_v3 }
  0x81   : > { %1512 = vrot.lane.b32.xlu0 %v1502_v60, %s2935_s24  ;;  %1526 = vrot.lane.b32.xlu2 %v1509_v58, %s2935_s24  ;;  %v1769_v7 = vld.sshfl [vmem:[#allocation1 + $0x8] sm:$0xff pattern:$0x75316420]  ;;  %v1768_v8 = vld.sshfl [vmem:[#allocation1] sm:$0xff pattern:$0x75316420] }
  0x82   : > { %1524 = vrot.lane.b32.xlu1 %v1508_v57, %s2935_s24  ;;  %1776 = vst [vmem:[#allocation1] ss:$2 sm:$0xff] %v3091_v5 }
  0x83   : > { %v3099_v10 = vpop.permute.xlu2 %249 }
  0x84   : > { %v262_v26 = vsel %vm255_vm0, %v3099_v10, %v3088_v4 }
  0x89   : > { %1520 = vrot.lane.b32.xlu0 %v1506_v56, %s2935_s24  ;;  %1781 = vrot.lane.b32.xlu2 %v1769_v7, %s2936_s25  ;;  %v3105_v20 = vld.sshfl [vmem:[#allocation1] sm:$0xff pattern:$0x75316420]  ;;  %v3107_v21 = vld.sshfl [vmem:[#allocation1 + $0x8] sm:$0xff pattern:$0x75316420] }
  0x8a   : > { %1522 = vrot.lane.b32.xlu1 %v1507_v55, %s2935_s24  ;;  %2031 = vst [vmem:[#allocation1] ss:$2 sm:$0xff] %v2990_v1  ;;  %v2736_v55 = vld [vmem:[%s3536_s1 + $0x8] sm:$0xf] }
  0x8b   : > { %v244_v23 = vpop.permute.xlu0 %243  ;;  %v3113_v25 = vpop.permute.xlu2 %720 }
  0x8c   : > { %v238_v28 = vpop.permute.xlu1 %237  ;;  %v258_v29 = vsel %vm255_vm0, %v242_v62, %v244_v23 }
  0x8d   : > { %2704 = vmatpush.msk.msra.mxu2 %vm268_vm1, %v258_v29 }
  0x8e   : > { %2705 = vmatmul.msk.f32.vlgmr.msra.gmra.mxu2 %vm264_vm2, %v3124_v30 }
  0x8f   : > { %2712 = vmatpush.msk.msrb.mxu2 %vm268_vm1, %v262_v26 }
  0x91   : > { %2720 = vmatpush.msk.msra.mxu2 %vm268_vm1, %v3036_v27  ;;  %1783 = vrot.lane.b32.xlu0 %v1770_v11, %s2936_s25  ;;  %v2038_v32 = vld.sshfl [vmem:[#allocation1] sm:$0xff pattern:$0x75316420]  ;;  %v2039_v33 = vld.sshfl [vmem:[#allocation1 + $0x8] sm:$0xff pattern:$0x75316420] }
  0x92   : > { %1779 = vrot.lane.b32.xlu2 %v1768_v8, %s2936_s25  ;;  %1528 = vrot.lane.b32.xlu1 %v1511_v63, %s2935_s24  ;;  %2046 = vst [vmem:[#allocation1] ss:$2 sm:$0xff] %v3091_v5  ;;  %v2312_v11 = vld.sshfl [vmem:[#allocation1 + $0x20] sm:$0xff pattern:$0x75316420] }
  0x93   : > { %v246_v36 = vpop.permute.xlu0 %245  ;;  %v3139_v37 = vpop.permute.xlu2 %988 }
  0x94   : > { %v240_v27 = vpop.permute.xlu1 %239  ;;  %v259_v38 = vsel %vm255_vm0, %v244_v23, %v246_v36 }
  0x95   : > { %v256_v39 = vsel %vm255_vm0, %v238_v28, %v240_v27  ;;  %v257_v40 = vsel %vm255_vm0, %v240_v27, %v242_v62  ;;  %2706 = vmatpush.msk.msra.mxu3 %vm268_vm1, %v259_v38  ;;  %v2313_v27 = vld.sshfl [vmem:[#allocation1 + $0x28] sm:$0xff pattern:$0x75316420]  ;;  %v2314_v38 = vld.sshfl [vmem:[#allocation1 + $0x30] sm:$0xff pattern:$0x75316420] }
  0x96   : > { %2700 = vmatpush.msk.msra.mxu0 %vm268_vm1, %v256_v39  ;;  %2702 = vmatpush.msk.msra.mxu1 %vm268_vm1, %v257_v40 }
  0x97   : > { %2701 = vmatmul.msk.f32.vlgmr.msra.gmra.mxu0 %vm264_vm2, %v3124_v30  ;;  %2703 = vmatmul.msk.f32.vlgmr.msra.gmra.mxu1 %vm264_vm2, %v3124_v30 }
  0x98   : > { %2707 = vmatmul.msk.f32.vlgmr.msra.gmra.mxu3 %vm264_vm2, %v3124_v30  ;;  %2713 = vmatmul.msk.f32.vlgmr.msrb.gmra.mxu2 %vm264_vm2, %v3124_v30 }
  0x99   : > { %1789 = vrot.lane.b32.xlu0 %v1773_v6, %s2936_s25  ;;  %v3158_v2 = vld.sshfl [vmem:[#allocation1] sm:$0xff pattern:$0x75316420]  ;;  %v3160_v41 = vld.sshfl [vmem:[#allocation1 + $0x8] sm:$0xff pattern:$0x75316420]  ;;  %2728 = vmatpush.msk.msrb.mxu2 %vm268_vm1, %v3019_v16 }
  0x9a   : > { %1785 = vrot.lane.b32.xlu2 %v1771_v12, %s2936_s25  ;;  %1791 = vrot.lane.b32.xlu1 %v1774_v17, %s2936_s25  ;;  %2301 = vst [vmem:[#allocation1] ss:$2 sm:$0xff] %v2990_v1  ;;  %v2041_v1 = vld.sshfl [vmem:[#allocation1 + $0x18] sm:$0xff pattern:$0x75316420] }
  0x9b   : > { %v254_v42 = vpop.permute.xlu0 %253  ;;  %v3166_v43 = vpop.permute.xlu2 %986  ;;  %v2040_v16 = vld.sshfl [vmem:[#allocation1 + $0x10] sm:$0xff pattern:$0x75316420] }
  0x9c   : > { %v248_v44 = vpop.permute.xlu1 %247  ;;  %v263_v45 = vsel %vm255_vm0, %v3088_v4, %v254_v42  ;;  %2303 = vst [vmem:[#allocation1 + $0x10] ss:$2 sm:$0xff] %v2987_v0  ;;  %v1002_v12 = vsel %vm998_vm4, %v3166_v43, %v3139_v37 }
  0x9d   : > { %v260_v46 = vsel %vm255_vm0, %v246_v36, %v248_v44  ;;  %v261_v47 = vsel %vm255_vm0, %v248_v44, %v3099_v10  ;;  %2714 = vmatpush.msk.msrb.mxu3 %vm268_vm1, %v263_v45  ;;  %v2774_v44 = vld [vmem:[%s3536_s1 + $0x10] sm:$0xf] }
  0x9e   : > { %2708 = vmatpush.msk.msrb.mxu0 %vm268_vm1, %v260_v46  ;;  %2710 = vmatpush.msk.msrb.mxu1 %vm268_vm1, %v261_v47 }
  0x9f   : > { %2709 = vmatmul.msk.f32.vlgmr.msrb.gmra.mxu0 %vm264_vm2, %v3124_v30  ;;  %2711 = vmatmul.msk.f32.vlgmr.msrb.gmra.mxu1 %vm264_vm2, %v3124_v30 }
  0xa0   : > { %2716 = vmatpush.msk.msra.mxu0 %vm268_vm1, %v254_v42  ;;  %2718 = vmatpush.msk.msra.mxu1 %vm268_vm1, %v3033_v24 }
  0xa1   : > { %1787 = vrot.lane.b32.xlu0 %v3097_v9, %s2936_s25  ;;  %2715 = vmatmul.msk.f32.vlgmr.msrb.gmra.mxu3 %vm264_vm2, %v3124_v30  ;;  %v2308_v63 = vld.sshfl [vmem:[#allocation1] sm:$0xff pattern:$0x75316420]  ;;  %v2309_v6 = vld.sshfl [vmem:[#allocation1 + $0x8] sm:$0xff pattern:$0x75316420] }
  0xa2   : > { %2049 = vrot.lane.b32.xlu1 %v2038_v32, %s2937_s28  ;;  %2724 = vmatpush.msk.msrb.mxu0 %vm268_vm1, %v3011_v14  ;;  %2316 = vst [vmem:[#allocation1] ss:$2 sm:$0xff] %v3091_v5 }
  0xa3   : > { %v725_v24 = vpop.permute.xlu0 %724  ;;  %v715_v50 = vpop.permute.xlu2 %714  ;;  %2726 = vmatpush.msk.msrb.mxu1 %vm268_vm1, %v3017_v15  ;;  %2722 = vmatpush.msk.msra.mxu3 %vm268_vm1, %v3009_v13  ;;  %v2311_v4 = vld.sshfl [vmem:[#allocation1 + $0x18] sm:$0xff pattern:$0x75316420]  ;;  %v2310_v28 = vld.sshfl [vmem:[#allocation1 + $0x10] sm:$0xff pattern:$0x75316420] }
  0xa4   : > { %v719_v52 = vpop.permute.xlu1 %718  ;;  %2721 = vmatmul.msk.f32.vlgmr.msra.gmra.mxu2 %vm264_vm2, %v207_v51  ;;  %2051 = vrot.lane.b32.xlu2 %v2039_v33, %s2937_s28 }
  0xa5   : > { %2730 = vmatpush.msk.msrb.mxu3 %vm268_vm1, %v3023_v18  ;;  %v735_v15 = vsel %vm732_vm3, %v719_v52, %v3113_v25 }
  0xa7   : > { %2717 = vmatmul.msk.f32.vlgmr.msra.gmra.mxu0 %vm264_vm2, %v3124_v30  ;;  %2719 = vmatmul.msk.f32.vlgmr.msra.gmra.mxu1 %vm264_vm2, %v207_v51  ;;  %v2315_v30 = vld.sshfl [vmem:[#allocation1 + $0x38] sm:$0xff pattern:$0x75316420] }
  0xa8   : > { %2732 = vmatpush.msk.msra.mxu0 %vm268_vm1, %v3025_v19  ;;  %2734 = vmatpush.msk.msra.mxu1 %vm268_vm1, %v3046_v34 }
  0xa9   : > { %1793 = vrot.lane.b32.xlu0 %v3111_v22, %s2936_s25  ;;  %2723 = vmatmul.msk.f32.vlgmr.msra.gmra.mxu3 %vm264_vm2, %v207_v51  ;;  %v2318_v39 = vld.sshfl [vmem:[#allocation1 + $0x8] sm:$0xff pattern:$0x75316420] }
  0xaa   : > { %1795 = vrot.lane.b32.xlu1 %v3105_v20, %s2936_s25 }
  0xab   : > { %v723_v0 = vpop.permute.xlu0 %722  ;;  %v3219_v3 = vpop.permute.xlu2 %994 }
  0xac   : > { %v727_v13 = vpop.permute.xlu1 %726  ;;  %2729 = vmatmul.msk.f32.vlgmr.msrb.gmra.mxu2 %vm264_vm2, %v207_v51  ;;  %1797 = vrot.lane.b32.xlu2 %v3107_v21, %s2936_s25  ;;  %v736_v14 = vsel %vm732_vm3, %v3113_v25, %v723_v0  ;;  %v737_v61 = vsel %vm732_vm3, %v723_v0, %v725_v24  ;;  %v2755_v25 = vld [vmem:[%s3536_s1 + $0xc] sm:$0xf]  ;;  %s2872_s25 = smul.u32 36, %s3544_s12 }
  0xad   : > { %v738_v60 = vsel %vm732_vm3, %v725_v24, %v727_v13 }
  0xaf   : > { %2725 = vmatmul.msk.f32.vlgmr.msrb.gmra.mxu0 %vm264_vm2, %v207_v51  ;;  %2727 = vmatmul.msk.f32.vlgmr.msrb.gmra.mxu1 %vm264_vm2, %v207_v51 }
  0xb0   : > { %2741 = vmatpush.msk.msrb.mxu0 %vm268_vm1, %v735_v15  ;;  %2743 = vmatpush.msk.msrb.mxu1 %vm268_vm1, %v736_v14  ;;  %v2793_v14 = vld [vmem:[%s3536_s1 + $0x14] sm:$0xf] }
  0xb1   : > { %2057 = vrot.lane.b32.xlu0 %v3131_v31, %s2937_s28  ;;  %2731 = vmatmul.msk.f32.vlgmr.msrb.gmra.mxu3 %vm264_vm2, %v207_v51  ;;  %v2317_v31 = vld.sshfl [vmem:[#allocation1] sm:$0xff pattern:$0x75316420] }
  0xb2   : > { %2059 = vrot.lane.b32.xlu1 %v3136_v35, %s2937_s28 }
  0xb3   : > { %v729_v18 = vpop.permute.xlu0 %728  ;;  %v983_v19 = vpop.permute.xlu2 %982 }
  0xb4   : > { %v985_v34 = vpop.permute.xlu1 %984  ;;  %2053 = vrot.lane.b32.xlu2 %v2040_v16, %s2937_s28  ;;  %v739_v53 = vsel %vm732_vm3, %v727_v13, %v729_v18 }
  0xb5   : > { %v1000_v62 = vsel %vm998_vm4, %v983_v19, %v985_v34  ;;  %v1001_v5 = vsel %vm998_vm4, %v985_v34, %v3166_v43 }
  0xb7   : > { %2733 = vmatmul.msk.f32.vlgmr.msra.gmra.mxu0 %vm264_vm2, %v207_v51  ;;  %2735 = vmatmul.msk.f32.vlgmr.msra.gmra.mxu1 %vm264_vm2, %v207_v51 }
  0xb8   : > { %2749 = vmatpush.msk.msra.mxu0 %vm268_vm1, %v739_v53 }
  0xb9   : > { %2055 = vrot.lane.b32.xlu0 %v2041_v1, %s2937_s28 }
  0xba   : > { %2065 = vrot.lane.b32.xlu1 %v3158_v2, %s2937_s28 }
  0xbb   : > { %v717_v54 = vpop.permute.xlu0 %716  ;;  %v3248_v56 = vpop.permute.xlu2 %1260 }
  0xbc   : > { %v3250_v57 = vpop.permute.xlu1 %1254  ;;  %v733_v58 = vsel %vm732_vm3, %v715_v50, %v717_v54  ;;  %v734_v59 = vsel %vm732_vm3, %v717_v54, %v719_v52  ;;  %2067 = vrot.lane.b32.xlu2 %v3160_v41, %s2937_s28 }
  0xbd   : > { %2737 = vmatpush.msk.msra.mxu2 %vm268_vm1, %v733_v58  ;;  %2739 = vmatpush.msk.msra.mxu3 %vm268_vm1, %v734_v59 }
  0xbe   : > { %2738 = vmatmul.msk.f32.vlgmr.msra.gmra.mxu2 %vm264_vm2, %v2736_v55  ;;  %2740 = vmatmul.msk.f32.vlgmr.msra.gmra.mxu3 %vm264_vm2, %v2736_v55 }
  0xbf   : > { %2742 = vmatmul.msk.f32.vlgmr.msrb.gmra.mxu0 %vm264_vm2, %v2736_v55  ;;  %2744 = vmatmul.msk.f32.vlgmr.msrb.gmra.mxu1 %vm264_vm2, %v2736_v55 }
  0xc0   : > { %2745 = vmatpush.msk.msrb.mxu2 %vm268_vm1, %v737_v61  ;;  %2747 = vmatpush.msk.msrb.mxu3 %vm268_vm1, %v738_v60 }
  0xc1   : > { %2758 = vmatpush.msk.msrb.mxu0 %vm268_vm1, %v1000_v62  ;;  %2061 = vrot.lane.b32.xlu0 %v3187_v48, %s2937_s28 }
  0xc2   : > { %2063 = vrot.lane.b32.xlu1 %v3192_v49, %s2937_s28  ;;  %s3511_s28 = scalar_lea.vmem %s3538_s3, %s2872_s25 }
  0xc3   : > { %v991_v7 = vpop.permute.xlu0 %990  ;;  %v1247_v8 = vpop.permute.xlu2 %1246 }
  0xc4   : > { %v731_v9 = vpop.permute.xlu1 %730  ;;  %2325 = vrot.lane.b32.xlu2 %v2311_v4, %s2938_s6  ;;  %v1003_v29 = vsel %vm998_vm4, %v3139_v37, %v991_v7 }
  0xc5   : > { %v740_v10 = vsel %vm732_vm3, %v729_v18, %v731_v9  ;;  %2753 = vmatpush.msk.msra.mxu2 %vm268_vm1, %v731_v9 }
  0xc6   : > { %2751 = vmatpush.msk.msra.mxu1 %vm268_vm1, %v740_v10  ;;  %2746 = vmatmul.msk.f32.vlgmr.msrb.gmra.mxu2 %vm264_vm2, %v2736_v55 }
  0xc7   : > { %2748 = vmatmul.msk.f32.vlgmr.msrb.gmra.mxu3 %vm264_vm2, %v2736_v55  ;;  %2750 = vmatmul.msk.f32.vlgmr.msra.gmra.mxu0 %vm264_vm2, %v2736_v55 }
  0xc8   : > { %2752 = vmatmul.msk.f32.vlgmr.msra.gmra.mxu1 %vm264_vm2, %v2736_v55  ;;  %2762 = vmatpush.msk.msrb.mxu2 %vm268_vm1, %v1002_v12 }
  0xc9   : > { %2760 = vmatpush.msk.msrb.mxu1 %vm268_vm1, %v1001_v5  ;;  %2327 = vrot.lane.b32.xlu0 %v2312_v11, %s2938_s6 }
  0xca   : > { %2319 = vrot.lane.b32.xlu1 %v2308_v63, %s2938_s6  ;;  %v2812_v63 = vld [vmem:[%s3536_s1 + $0x18] sm:$0xf] }
  0xcb   : > { %v993_v17 = vpop.permute.xlu0 %992  ;;  %v1259_v20 = vpop.permute.xlu2 %1258 }
  0xcc   : > { %v1004_v21 = vsel %vm998_vm4, %v991_v7, %v993_v17  ;;  %v1005_v22 = vsel %vm998_vm4, %v993_v17, %v3219_v3  ;;  %v981_v23 = vpop.permute.xlu1 %980  ;;  %2321 = vrot.lane.b32.xlu2 %v2309_v6, %s2938_s6  ;;  %v1271_v46 = vsel %vm1264_vm5, %v1259_v20, %v3248_v56 }
  0xcd   : > { %v999_v26 = vsel %vm998_vm4, %v981_v23, %v983_v19  ;;  %2766 = vmatpush.msk.msra.mxu0 %vm268_vm1, %v1004_v21  ;;  %2768 = vmatpush.msk.msra.mxu1 %vm268_vm1, %v1005_v22  ;;  %v3408_v23 = vld [vmem:[%s3536_s1 + $0x1c] sm:$0xf] }
  0xce   : > { %2756 = vmatpush.msk.msra.mxu3 %vm268_vm1, %v999_v26  ;;  %2754 = vmatmul.msk.f32.vlgmr.msra.gmra.mxu2 %vm264_vm2, %v2736_v55 }
  0xcf   : > { %2757 = vmatmul.msk.f32.vlgmr.msra.gmra.mxu3 %vm264_vm2, %v2755_v25  ;;  %2759 = vmatmul.msk.f32.vlgmr.msrb.gmra.mxu0 %vm264_vm2, %v2755_v25 }
  0xd0   : > { %2761 = vmatmul.msk.f32.vlgmr.msrb.gmra.mxu1 %vm264_vm2, %v2755_v25  ;;  %2764 = vmatpush.msk.msrb.mxu3 %vm268_vm1, %v1003_v29 }
  0xd1   : > { %2323 = vrot.lane.b32.xlu0 %v2310_v28, %s2938_s6 }
  0xd2   : > { %2333 = vrot.lane.b32.xlu1 %v2315_v30, %s2938_s6 }
  0xd3   : > { %v1253_v32 = vpop.permute.xlu0 %1252  ;;  %v1515_v35 = vpop.permute.xlu2 %1514 }
  0xd4   : > { %v997_v33 = vpop.permute.xlu1 %996  ;;  %2335 = vrot.lane.b32.xlu2 %v2317_v31, %s2938_s6  ;;  %v1268_v37 = vsel %vm1264_vm5, %v1253_v32, %v3250_v57 }
  0xd5   : > { %v1006_v36 = vsel %vm998_vm4, %v3219_v3, %v997_v33  ;;  %2772 = vmatpush.msk.msra.mxu3 %vm268_vm1, %v997_v33 }
  0xd6   : > { %2770 = vmatpush.msk.msra.mxu2 %vm268_vm1, %v1006_v36 }
  0xd7   : > { %2763 = vmatmul.msk.f32.vlgmr.msrb.gmra.mxu2 %vm264_vm2, %v2755_v25  ;;  %2765 = vmatmul.msk.f32.vlgmr.msrb.gmra.mxu3 %vm264_vm2, %v2755_v25 }
  0xd8   : > { %2767 = vmatmul.msk.f32.vlgmr.msra.gmra.mxu0 %vm264_vm2, %v2755_v25  ;;  %2769 = vmatmul.msk.f32.vlgmr.msra.gmra.mxu1 %vm264_vm2, %v2755_v25 }
  0xd9   : > { %2781 = vmatpush.msk.msrb.mxu3 %vm268_vm1, %v1268_v37  ;;  %2329 = vrot.lane.b32.xlu0 %v2313_v27, %s2938_s6 }
  0xda   : > { %2331 = vrot.lane.b32.xlu1 %v2314_v38, %s2938_s6 }
  0xdb   : > { %v1249_v40 = vpop.permute.xlu0 %1248  ;;  %v1527_v45 = vpop.permute.xlu2 %1526 }
  0xdc   : > { %v1251_v2 = vpop.permute.xlu1 %1250  ;;  %v1265_v41 = vsel %vm1264_vm5, %v1247_v8, %v1249_v40  ;;  %2337 = vrot.lane.b32.xlu2 %v2318_v39, %s2938_s6 }
  0xdd   : > { %v1267_v42 = vsel %vm1264_vm5, %v1251_v2, %v1253_v32  ;;  %v1266_v43 = vsel %vm1264_vm5, %v1249_v40, %v1251_v2  ;;  %2775 = vmatpush.msk.msrb.mxu0 %vm268_vm1, %v1265_v41 }
  0xde   : > { %2777 = vmatpush.msk.msrb.mxu1 %vm268_vm1, %v1266_v43  ;;  %2779 = vmatpush.msk.msrb.mxu2 %vm268_vm1, %v1267_v42 }
  0xdf   : > { %2771 = vmatmul.msk.f32.vlgmr.msra.gmra.mxu2 %vm264_vm2, %v2755_v25  ;;  %2773 = vmatmul.msk.f32.vlgmr.msra.gmra.mxu3 %vm264_vm2, %v2755_v25 }
  0xe0   : > { %2776 = vmatmul.msk.f32.vlgmr.msrb.gmra.mxu0 %vm264_vm2, %v2774_v44  ;;  %2778 = vmatmul.msk.f32.vlgmr.msrb.gmra.mxu1 %vm264_vm2, %v2774_v44 }
  0xe1   : > { %2787 = vmatpush.msk.msra.mxu2 %vm268_vm1, %v1271_v46 }
  0xe3   : > { %v1263_v47 = vpop.permute.xlu0 %1262  ;;  %v1782_v24 = vpop.permute.xlu2 %1781 }
  0xe4   : > { %v1257_v1 = vpop.permute.xlu1 %1256  ;;  %v1272_v16 = vsel %vm1264_vm5, %v3248_v56, %v1263_v47 }
  0xe5   : > { %v1269_v48 = vsel %vm1264_vm5, %v3250_v57, %v1257_v1  ;;  %v1270_v49 = vsel %vm1264_vm5, %v1257_v1, %v1259_v20  ;;  %2789 = vmatpush.msk.msra.mxu3 %vm268_vm1, %v1272_v16 }
  0xe6   : > { %2783 = vmatpush.msk.msra.mxu0 %vm268_vm1, %v1269_v48  ;;  %2785 = vmatpush.msk.msra.mxu1 %vm268_vm1, %v1270_v49 }
  0xe7   : > { %2780 = vmatmul.msk.f32.vlgmr.msrb.gmra.mxu2 %vm264_vm2, %v2774_v44  ;;  %2782 = vmatmul.msk.f32.vlgmr.msrb.gmra.mxu3 %vm264_vm2, %v2774_v44 }
  0xe8   : > { %2784 = vmatmul.msk.f32.vlgmr.msra.gmra.mxu0 %vm264_vm2, %v2774_v44  ;;  %2786 = vmatmul.msk.f32.vlgmr.msra.gmra.mxu1 %vm264_vm2, %v2774_v44 }
  0xe9   : > { %2791 = vmatpush.msk.msrb.mxu0 %vm268_vm1, %v1263_v47 }
  0xeb   : > { %v1517_v50 = vpop.permute.xlu0 %1516 }
  0xec   : > { %v1519_v51 = vpop.permute.xlu1 %1518  ;;  %v1532_v52 = vsel %vm1530_vm6, %v1515_v35, %v1517_v50  ;;  %v1780_v3 = vpop.permute.xlu2 %1779 }
  0xed   : > { %v1533_v0 = vsel %vm1530_vm6, %v1517_v50, %v1519_v51  ;;  %2796 = vmatpush.msk.msrb.mxu2 %vm268_vm1, %v1532_v52  ;;  %v1800_v58 = vsel %vm1799_vm7, %v1780_v3, %v1782_v24  ;;  %v2559_v3 = vld [vmem:[%s3537_s2] sm:$0xf] }
  0xee   : > { %2798 = vmatpush.msk.msrb.mxu3 %vm268_vm1, %v1533_v0 }
  0xef   : > { %2788 = vmatmul.msk.f32.vlgmr.msra.gmra.mxu2 %vm264_vm2, %v2774_v44  ;;  %2790 = vmatmul.msk.f32.vlgmr.msra.gmra.mxu3 %vm264_vm2, %v2774_v44 }
  0xf0   : > { %2792 = vmatmul.msk.f32.vlgmr.msrb.gmra.mxu0 %vm264_vm2, %v2774_v44 }
  0xf3   : > { %v1513_v13 = vpop.permute.xlu0 %1512 }
  0xf4   : > { %v1525_v15 = vpop.permute.xlu1 %1524  ;;  %v1531_v18 = vsel %vm1530_vm6, %v1513_v13, %v1515_v35  ;;  %v1786_v55 = vpop.permute.xlu2 %1785 }
  0xf5   : > { %v1537_v19 = vsel %vm1530_vm6, %v1525_v15, %v1527_v45  ;;  %2794 = vmatpush.msk.msrb.mxu1 %vm268_vm1, %v1531_v18 }
  0xf6   : > { %2795 = vmatmul.msk.f32.vlgmr.msrb.gmra.mxu1 %vm264_vm2, %v2793_v14  ;;  %2806 = vmatpush.msk.msra.mxu3 %vm268_vm1, %v1537_v19 }
  0xf7   : > { %2797 = vmatmul.msk.f32.vlgmr.msrb.gmra.mxu2 %vm264_vm2, %v2793_v14  ;;  %2799 = vmatmul.msk.f32.vlgmr.msrb.gmra.mxu3 %vm264_vm2, %v2793_v14 }
  0xfb   : > { %v1521_v34 = vpop.permute.xlu0 %1520 }
  0xfc   : > { %v1523_v53 = vpop.permute.xlu1 %1522  ;;  %v1534_v54 = vsel %vm1530_vm6, %v1519_v51, %v1521_v34 }
  0xfd   : > { %v1536_v56 = vsel %vm1530_vm6, %v1523_v53, %v1525_v15  ;;  %v1535_v57 = vsel %vm1530_vm6, %v1521_v34, %v1523_v53  ;;  %2800 = vmatpush.msk.msra.mxu0 %vm268_vm1, %v1534_v54 }
  0xfe   : > { %2802 = vmatpush.msk.msra.mxu1 %vm268_vm1, %v1535_v57  ;;  %2804 = vmatpush.msk.msra.mxu2 %vm268_vm1, %v1536_v56  ;;  %v2052_v6 = vpop.permute.xlu2 %2051 }
  0xff   : > { %2801 = vmatmul.msk.f32.vlgmr.msra.gmra.mxu0 %vm264_vm2, %v2793_v14  ;;  %2803 = vmatmul.msk.f32.vlgmr.msra.gmra.mxu1 %vm264_vm2, %v2793_v14 }
 0x100   : > { %2805 = vmatmul.msk.f32.vlgmr.msra.gmra.mxu2 %vm264_vm2, %v2793_v14  ;;  %2807 = vmatmul.msk.f32.vlgmr.msra.gmra.mxu3 %vm264_vm2, %v2793_v14 }
 0x101   : > { %2813 = vmatpush.msk.msrb.mxu2 %vm268_vm1, %v1800_v58 }
 0x103   : > { %v1784_v59 = vpop.permute.xlu0 %1783 }
 0x104   : > { %v1801_v60 = vsel %vm1799_vm7, %v1782_v24, %v1784_v59  ;;  %v1529_v61 = vpop.permute.xlu1 %1528  ;;  %v1802_v4 = vsel %vm1799_vm7, %v1784_v59, %v1786_v55  ;;  %v2939_v24 = vmov 0  }
 0x105   : > { %v1538_v62 = vsel %vm1530_vm6, %v1527_v45, %v1529_v61  ;;  %2810 = vmatpush.msk.msrb.mxu1 %vm268_vm1, %v1529_v61  ;;  %2815 = vmatpush.msk.msrb.mxu3 %vm268_vm1, %v1801_v60 }
 0x106   : > { %2808 = vmatpush.msk.msrb.mxu0 %vm268_vm1, %v1538_v62  ;;  %v1798_v10 = vpop.permute.xlu2 %1797  ;;  %2906 = vset.pattern.permute.xlu0 %v2939_v24 }
 0x107   : > { %2809 = vmatmul.msk.f32.vlgmr.msrb.gmra.mxu0 %vm264_vm2, %v2793_v14  ;;  %2811 = vmatmul.msk.f32.vlgmr.msrb.gmra.mxu1 %vm264_vm2, %v2793_v14 }
 0x108   : > { %2814 = vmatmul.msk.f32.vlgmr.msrb.gmra.mxu2 %vm264_vm2, %v2812_v63  ;;  %2816 = vmatmul.msk.f32.vlgmr.msrb.gmra.mxu3 %vm264_vm2, %v2812_v63 }
 0x109   : > { %2817 = vmatpush.msk.msra.mxu0 %vm268_vm1, %v1802_v4  ;;  %2562 = vperm.xlu0 %2906, %v2559_v3  }
 0x10b   : > { %v1790_v7 = vpop.permute.xlu0 %1789 }
 0x10c   : > { %v1792_v8 = vpop.permute.xlu1 %1791 }
 0x10d   : > { %v1805_v9 = vsel %vm1799_vm7, %v1790_v7, %v1792_v8 }
 0x10e   : > { %2823 = vmatpush.msk.msra.mxu3 %vm268_vm1, %v1805_v9  ;;  %v2054_v26 = vpop.permute.xlu2 %2053 }
 0x10f   : > { %2818 = vmatmul.msk.f32.vlgmr.msra.gmra.mxu0 %vm264_vm2, %v2812_v63  ;;  %v2071_v27 = vsel %vm2069_vm8, %v2052_v6, %v2054_v26 }
 0x110   : > { %2824 = vmatmul.msk.f32.vlgmr.msra.gmra.mxu3 %vm264_vm2, %v2812_v63 }
 0x111   : > { %v344_v12 = vpop.f32.mrf.mxu2 }
 0x113   : > { %v1788_v11 = vpop.permute.xlu0 %1787 }
 0x114   : > { %v304_v5 = vpop.f32.mrf.mxu0  ;;  %v324_v17 = vpop.f32.mrf.mxu1  ;;  %v1803_v20 = vsel %vm1799_vm7, %v1786_v55, %v1788_v11  ;;  %v1804_v21 = vsel %vm1799_vm7, %v1788_v11, %v1790_v7 }
 0x115   : > { %v2050_v22 = vpop.permute.xlu1 %2049  ;;  %2819 = vmatpush.msk.msra.mxu1 %vm268_vm1, %v1803_v20  ;;  %2821 = vmatpush.msk.msra.mxu2 %vm268_vm1, %v1804_v21 }
 0x116   : > { %v2070_v25 = vsel %vm2069_vm8, %v2050_v22, %v2052_v6  ;;  %2820 = vmatmul.msk.f32.vlgmr.msra.gmra.mxu1 %vm264_vm2, %v2812_v63  ;;  %2822 = vmatmul.msk.f32.vlgmr.msra.gmra.mxu2 %vm264_vm2, %v2812_v63  ;;  %v2068_v39 = vpop.permute.xlu2 %2067  ;;  %v2850_v6 = vld [vmem:[%s3536_s1 + $0x20] sm:$0xf] }
 0x117   : > { %2832 = vmatpush.msk.msrb.mxu3 %vm268_vm1, %v2070_v25 }
 0x118   : > { %2833 = vmatmul.msk.f32.vlgmr.msrb.gmra.mxu3 %vm264_vm2, %v3408_v23 }
 0x11b   : > { %v1794_v28 = vpop.permute.xlu0 %1793  ;;  %v364_v29 = vpop.f32.mrf.mxu3 }
 0x11c   : > { %v384_v30 = vpop.f32.mrf.mxu0  ;;  %v404_v31 = vpop.f32.mrf.mxu1  ;;  %v1806_v32 = vsel %vm1799_vm7, %v1792_v8, %v1794_v28 }
 0x11d   : > { %v1796_v33 = vpop.permute.xlu1 %1795  ;;  %2825 = vmatpush.msk.msrb.mxu0 %vm268_vm1, %v1806_v32  ;;  %v424_v35 = vpop.f32.mrf.mxu2 }
 0x11e   : > { %v1807_v36 = vsel %vm1799_vm7, %v1794_v28, %v1796_v33  ;;  %v1808_v37 = vsel %vm1799_vm7, %v1796_v33, %v1798_v10  ;;  %2826 = vmatmul.msk.f32.vlgmr.msrb.gmra.mxu0 %vm264_vm2, %v2812_v63  ;;  %v2326_v15 = vpop.permute.xlu2 %2325 }
 0x11f   : > { %2827 = vmatpush.msk.msrb.mxu1 %vm268_vm1, %v1807_v36  ;;  %2829 = vmatpush.msk.msrb.mxu2 %vm268_vm1, %v1808_v37 }
 0x120   : > { %2828 = vmatmul.msk.f32.vlgmr.msrb.gmra.mxu1 %vm264_vm2, %v2812_v63  ;;  %2830 = vmatmul.msk.f32.vlgmr.msrb.gmra.mxu2 %vm264_vm2, %v2812_v63 }
 0x121   : > { %2834 = vmatpush.msk.msra.mxu0 %vm268_vm1, %v2071_v27 }
 0x123   : > { %v2058_v38 = vpop.permute.xlu0 %2057 }
 0x124   : > { %v464_v40 = vpop.f32.mrf.mxu0  ;;  %v522_v2 = vpop.f32.mrf.mxu1 }
 0x125   : > { %v3427_v41 = vadd.f32 %v522_v2, %v304_v5  ;;  %v2060_v42 = vpop.permute.xlu1 %2059  ;;  %v444_v43 = vpop.f32.mrf.mxu3 }
 0x126   : > { %v2074_v44 = vsel %vm2069_vm8, %v2058_v38, %v2060_v42  ;;  %2835 = vmatmul.msk.f32.vlgmr.msra.gmra.mxu0 %vm264_vm2, %v3408_v23  ;;  %v2322_v63 = vpop.permute.xlu2 %2321 }
 0x127   : > { %2840 = vmatpush.msk.msra.mxu3 %vm268_vm1, %v2074_v44  ;;  %v542_v45 = vpop.f32.mrf.mxu2 }
 0x128   : > { %2841 = vmatmul.msk.f32.vlgmr.msra.gmra.mxu3 %vm264_vm2, %v3408_v23  ;;  %v543_v46 = vadd.f32 %v542_v45, %v324_v17 }
 0x12b   : > { %v2056_v47 = vpop.permute.xlu0 %2055 }
 0x12c   : > { %v582_v1 = vpop.f32.mrf.mxu0  ;;  %v602_v16 = vpop.f32.mrf.mxu1  ;;  %v2072_v48 = vsel %vm2069_vm8, %v2054_v26, %v2056_v47  ;;  %v2073_v49 = vsel %vm2069_vm8, %v2056_v47, %v2058_v38 }
 0x12d   : > { %v583_v50 = vadd.f32 %v582_v1, %v364_v29  ;;  %v3437_v51 = vadd.f32 %v602_v16, %v384_v30  ;;  %v2066_v52 = vpop.permute.xlu1 %2065  ;;  %2836 = vmatpush.msk.msra.mxu1 %vm268_vm1, %v2072_v48  ;;  %2838 = vmatpush.msk.msra.mxu2 %vm268_vm1, %v2073_v49  ;;  %v562_v0 = vpop.f32.mrf.mxu3 }
 0x12e   : > { %v2078_v13 = vsel %vm2069_vm8, %v2066_v52, %v2068_v39  ;;  %2837 = vmatmul.msk.f32.vlgmr.msra.gmra.mxu1 %vm264_vm2, %v3408_v23  ;;  %2839 = vmatmul.msk.f32.vlgmr.msra.gmra.mxu2 %vm264_vm2, %v3408_v23  ;;  %v563_v14 = vadd.f32 %v562_v0, %v344_v12 }
 0x12f   : > { %2848 = vmatpush.msk.msrb.mxu3 %vm268_vm1, %v2078_v13  ;;  %v622_v18 = vpop.f32.mrf.mxu2 }
 0x130   : > { %2849 = vmatmul.msk.f32.vlgmr.msrb.gmra.mxu3 %vm264_vm2, %v3408_v23  ;;  %v623_v19 = vadd.f32 %v622_v18, %v404_v31 }
 0x133   : > { %v2062_v34 = vpop.permute.xlu0 %2061 }
 0x134   : > { %v662_v53 = vpop.f32.mrf.mxu0  ;;  %v2075_v54 = vsel %vm2069_vm8, %v2060_v42, %v2062_v34  ;;  %v682_v55 = vpop.f32.mrf.mxu1 }
 0x135   : > { %v663_v56 = vadd.f32 %v662_v53, %v444_v43  ;;  %v2064_v57 = vpop.permute.xlu1 %2063  ;;  %v3453_v58 = vadd.f32 %v682_v55, %v464_v40  ;;  %2842 = vmatpush.msk.msrb.mxu0 %vm268_vm1, %v2075_v54  ;;  %v642_v59 = vpop.f32.mrf.mxu3 }
 0x136   : > { %v2076_v60 = vsel %vm2069_vm8, %v2062_v34, %v2064_v57  ;;  %v2077_v61 = vsel %vm2069_vm8, %v2064_v57, %v2066_v52  ;;  %2843 = vmatmul.msk.f32.vlgmr.msrb.gmra.mxu0 %vm264_vm2, %v3408_v23  ;;  %v643_v62 = vadd.f32 %v642_v59, %v424_v35 }
 0x137   : > { %2844 = vmatpush.msk.msrb.mxu1 %vm268_vm1, %v2076_v60  ;;  %2846 = vmatpush.msk.msrb.mxu2 %vm268_vm1, %v2077_v61 }
 0x138   : > { %2845 = vmatmul.msk.f32.vlgmr.msrb.gmra.mxu1 %vm264_vm2, %v3408_v23  ;;  %2847 = vmatmul.msk.f32.vlgmr.msrb.gmra.mxu2 %vm264_vm2, %v3408_v23  ;;  %v2336_v23 = vpop.permute.xlu2 %2335 }
 0x13b   : > { %v2328_v4 = vpop.permute.xlu0 %2327 }
 0x13c   : > { %v819_v7 = vpop.f32.mrf.mxu0  ;;  %v2343_v8 = vsel %vm2339_vm9, %v2326_v15, %v2328_v4  ;;  %v839_v9 = vpop.f32.mrf.mxu1 }
 0x13d   : > { %v944_v10 = vadd.f32 %v819_v7, %v563_v14  ;;  %v2320_v11 = vpop.permute.xlu1 %2319  ;;  %v945_v12 = vadd.f32 %v839_v9, %v583_v50  ;;  %2857 = vmatpush.msk.msra.mxu3 %vm268_vm1, %v2343_v8 }
 0x13e   : > { %v2340_v5 = vsel %vm2339_vm9, %v2320_v11, %v2322_v63  ;;  %2858 = vmatmul.msk.f32.vlgmr.msra.gmra.mxu3 %vm264_vm2, %v2850_v6 }
 0x13f   : > { %2851 = vmatpush.msk.msra.mxu0 %vm268_vm1, %v2340_v5 }
 0x140   : > { %2852 = vmatmul.msk.f32.vlgmr.msra.gmra.mxu0 %vm264_vm2, %v2850_v6  ;;  %v2338_v40 = vpop.permute.xlu2 %2337 }
 0x141   : > { %v779_v17 = vpop.f32.mrf.mxu2  ;;  %v799_v20 = vpop.f32.mrf.mxu3  ;;  %v2348_v1 = vsel %vm2339_vm9, %v2336_v23, %v2338_v40 }
 0x142   : > { %v942_v21 = vadd.f32 %v779_v17, %v3427_v41  ;;  %v943_v22 = vadd.f32 %v799_v20, %v543_v46 }
 0x143   : > { %v2324_v25 = vpop.permute.xlu0 %2323 }
 0x144   : > { %v899_v26 = vpop.f32.mrf.mxu0  ;;  %v2341_v28 = vsel %vm2339_vm9, %v2322_v63, %v2324_v25  ;;  %v2342_v29 = vsel %vm2339_vm9, %v2324_v25, %v2326_v15 }
 0x145   : > { %v948_v30 = vadd.f32 %v899_v26, %v643_v62  ;;  %v2334_v31 = vpop.permute.xlu1 %2333  ;;  %v919_v32 = vpop.f32.mrf.mxu1  ;;  %2853 = vmatpush.msk.msra.mxu1 %vm268_vm1, %v2341_v28  ;;  %2855 = vmatpush.msk.msra.mxu2 %vm268_vm1, %v2342_v29 }
 0x146   : > { %v2347_v33 = vsel %vm2339_vm9, %v2334_v31, %v2336_v23  ;;  %v949_v35 = vadd.f32 %v919_v32, %v663_v56  ;;  %2854 = vmatmul.msk.f32.vlgmr.msra.gmra.mxu1 %vm264_vm2, %v2850_v6  ;;  %2856 = vmatmul.msk.f32.vlgmr.msra.gmra.mxu2 %vm264_vm2, %v2850_v6 }
 0x147   : > { %2865 = vmatpush.msk.msrb.mxu3 %vm268_vm1, %v2347_v33 }
 0x148   : > { %2866 = vmatmul.msk.f32.vlgmr.msrb.gmra.mxu3 %vm264_vm2, %v2850_v6 }
 0x149   : > { %v859_v36 = vpop.f32.mrf.mxu2 }
 0x14a   : > { %v946_v37 = vadd.f32 %v859_v36, %v3437_v51  ;;  %v879_v27 = vpop.f32.mrf.mxu3 }
 0x14b   : > { %v947_v38 = vadd.f32 %v879_v27, %v623_v19  ;;  %v2330_v39 = vpop.permute.xlu0 %2329 }
 0x14c   : > { %v1065_v2 = vpop.f32.mrf.mxu0  ;;  %v2344_v41 = vsel %vm2339_vm9, %v2328_v4, %v2330_v39 }
 0x14d   : > { %v1209_v42 = vadd.f32 %v1065_v2, %v943_v22  ;;  %v2332_v43 = vpop.permute.xlu1 %2331  ;;  %v1085_v44 = vpop.f32.mrf.mxu1  ;;  %2859 = vmatpush.msk.msrb.mxu0 %vm268_vm1, %v2344_v41 }
 0x14e   : > { %v2345_v45 = vsel %vm2339_vm9, %v2330_v39, %v2332_v43  ;;  %v2346_v46 = vsel %vm2339_vm9, %v2332_v43, %v2334_v31  ;;  %v1210_v47 = vadd.f32 %v1085_v44, %v944_v10  ;;  %2860 = vmatmul.msk.f32.vlgmr.msrb.gmra.mxu0 %vm264_vm2, %v2850_v6 }
 0x14f   : > { %2861 = vmatpush.msk.msrb.mxu1 %vm268_vm1, %v2345_v45  ;;  %2863 = vmatpush.msk.msrb.mxu2 %vm268_vm1, %v2346_v46 }
 0x150   : > { %2862 = vmatmul.msk.f32.vlgmr.msrb.gmra.mxu1 %vm264_vm2, %v2850_v6  ;;  %2864 = vmatmul.msk.f32.vlgmr.msrb.gmra.mxu2 %vm264_vm2, %v2850_v6 }
 0x151   : > { %2867 = vmatpush.msk.msra.mxu0 %vm268_vm1, %v2348_v1  ;;  %v939_v16 = vpop.f32.mrf.mxu2 }
 0x152   : > { %v950_v48 = vadd.f32 %v939_v16, %v3453_v58  ;;  %v1045_v49 = vpop.f32.mrf.mxu3 }
 0x153   : > { %v1208_v24 = vadd.f32 %v1045_v49, %v942_v21 }
 0x155   : > { %v1145_v50 = vpop.f32.mrf.mxu0  ;;  %v1165_v51 = vpop.f32.mrf.mxu1 }
 0x156   : > { %v1213_v52 = vadd.f32 %v1145_v50, %v947_v38  ;;  %v1214_v0 = vadd.f32 %v1165_v51, %v948_v30  ;;  %2868 = vmatmul.msk.f32.vlgmr.msra.gmra.mxu0 %vm264_vm2, %v2850_v6 }
 0x15a   : > { %v1105_v3 = vpop.f32.mrf.mxu2  ;;  %v1125_v13 = vpop.f32.mrf.mxu3 }
 0x15b   : > { %v1211_v14 = vadd.f32 %v1105_v3, %v945_v12  ;;  %v1212_v15 = vadd.f32 %v1125_v13, %v946_v37 }
 0x15d   : > { %v1311_v18 = vpop.f32.mrf.mxu0  ;;  %v1331_v19 = vpop.f32.mrf.mxu1 }
 0x15e   : > { %v1474_v34 = vadd.f32 %v1311_v18, %v1208_v24  ;;  %v1475_v53 = vadd.f32 %v1331_v19, %v1209_v42 }
 0x162   : > { %v1185_v54 = vpop.f32.mrf.mxu2  ;;  %v1205_v55 = vpop.f32.mrf.mxu3 }
 0x163   : > { %v1215_v56 = vadd.f32 %v1185_v54, %v949_v35  ;;  %v1216_v57 = vadd.f32 %v1205_v55, %v950_v48 }
 0x165   : > { %v1391_v58 = vpop.f32.mrf.mxu0  ;;  %v1411_v59 = vpop.f32.mrf.mxu1 }
 0x166   : > { %v1478_v60 = vadd.f32 %v1391_v58, %v1212_v15  ;;  %v1479_v61 = vadd.f32 %v1411_v59, %v1213_v52 }
 0x16a   : > { %v1351_v62 = vpop.f32.mrf.mxu2  ;;  %v1371_v63 = vpop.f32.mrf.mxu3 }
 0x16b   : > { %v1476_v4 = vadd.f32 %v1351_v62, %v1210_v47  ;;  %v1477_v6 = vadd.f32 %v1371_v63, %v1211_v14 }
 0x16d   : > { %v1471_v7 = vpop.f32.mrf.mxu0 }
 0x16e   : > { %v3499_v8 = vadd.f32 %v1471_v7, %v1216_v57 }
 0x172   : > { %v1431_v9 = vpop.f32.mrf.mxu2  ;;  %v1451_v10 = vpop.f32.mrf.mxu3 }
 0x173   : > { %v3501_v11 = vadd.f32 %v1431_v9, %v1214_v0  ;;  %v1481_v12 = vadd.f32 %v1451_v10, %v1215_v56  ;;  %v1577_v17 = vpop.f32.mrf.mxu1 }
 0x174   : > { %v1740_v45 = vadd.f32 %v1577_v17, %v1474_v34 }
 0x17a   : > { %v1617_v5 = vpop.f32.mrf.mxu3  ;;  %v1597_v20 = vpop.f32.mrf.mxu2 }
 0x17b   : > { %v1741_v46 = vadd.f32 %v1597_v20, %v1475_v53  ;;  %v1742_v13 = vadd.f32 %v1617_v5, %v1476_v4  ;;  %v2563_v19 = vpop.permute.xlu0 %2562 }
 0x17c   : > { %v1637_v21 = vpop.f32.mrf.mxu0  ;;  %v1657_v23 = vpop.f32.mrf.mxu1 }
 0x17d   : > { %v1743_v47 = vadd.f32 %v1637_v21, %v1477_v6  ;;  %v1744_v53 = vadd.f32 %v1657_v23, %v1478_v60 }
 0x183   : > { %v3503_v22 = vpop.f32.mrf.mxu3  ;;  %v1677_v25 = vpop.f32.mrf.mxu2 }
 0x184   : > { %v1717_v26 = vpop.f32.mrf.mxu0  ;;  %v1737_v29 = vpop.f32.mrf.mxu1  ;;  %v1745_v55 = vadd.f32 %v1677_v25, %v1479_v61  ;;  %v1746_v23 = vadd.f32 %v3503_v22, %v3501_v11 }
 0x185   : > { %v1747_v56 = vadd.f32 %v1717_v26, %v1481_v12  ;;  %v1748_v25 = vadd.f32 %v1737_v29, %v3499_v8 }
 0x18b   : > { %v1867_v28 = vpop.f32.mrf.mxu3  ;;  %v1847_v30 = vpop.f32.mrf.mxu2 }
 0x18c   : > { %v1887_v31 = vpop.f32.mrf.mxu0  ;;  %v2010_v1 = vadd.f32 %v1847_v30, %v1740_v45  ;;  %v2011_v16 = vadd.f32 %v1867_v28, %v1741_v46 }
 0x18d   : > { %v2012_v34 = vadd.f32 %v1887_v31, %v1742_v13 }
 0x193   : > { %v1947_v32 = vpop.f32.mrf.mxu3  ;;  %v1907_v33 = vpop.f32.mrf.mxu1 }
 0x194   : > { %v2013_v48 = vadd.f32 %v1907_v33, %v1743_v47  ;;  %v2015_v6 = vadd.f32 %v1947_v32, %v1745_v55 }
 0x199   : > { %v1927_v35 = vpop.f32.mrf.mxu2 }
 0x19a   : > { %v2014_v63 = vadd.f32 %v1927_v35, %v1744_v53 }
 0x19b   : > { %v3505_v36 = vpop.f32.mrf.mxu0  ;;  %v2117_v37 = vpop.f32.mrf.mxu3 }
 0x19c   : > { %v2280_v51 = vadd.f32 %v2117_v37, %v2010_v1  ;;  %v2016_v35 = vadd.f32 %v3505_v36, %v1746_v23 }
 0x19d   : > { %v1987_v27 = vpop.f32.mrf.mxu1 }
 0x19e   : > { %v2017_v7 = vadd.f32 %v1987_v27, %v1747_v56 }
 0x1a3   : > { %v2007_v38 = vpop.f32.mrf.mxu2  ;;  %v2137_v39 = vpop.f32.mrf.mxu0 }
 0x1a4   : > { %v2281_v52 = vadd.f32 %v2137_v39, %v2011_v16  ;;  %v2018_v33 = vadd.f32 %v2007_v38, %v1748_v25 }
 0x1ab   : > { %v2197_v40 = vpop.f32.mrf.mxu3  ;;  %v2157_v2 = vpop.f32.mrf.mxu1 }
 0x1ac   : > { %v2282_v57 = vadd.f32 %v2157_v2, %v2012_v34  ;;  %v2284_v60 = vadd.f32 %v2197_v40, %v2014_v63 }
 0x1b1   : > { %v2177_v41 = vpop.f32.mrf.mxu2 }
 0x1b2   : > { %v2283_v0 = vadd.f32 %v2177_v41, %v2013_v48 }
 0x1b3   : > { %v2217_v42 = vpop.f32.mrf.mxu0  ;;  %v2277_v43 = vpop.f32.mrf.mxu3 }
 0x1b4   : > { %v2285_v5 = vadd.f32 %v2217_v42, %v2015_v6  ;;  %v2288_v27 = vadd.f32 %v2277_v43, %v2018_v33 }
 0x1b5   : > { %v2237_v44 = vpop.f32.mrf.mxu1 }
 0x1b6   : > { %v2286_v39 = vadd.f32 %v2237_v44, %v2016_v35 }
 0x1bb   : > { %v2257_v49 = vpop.f32.mrf.mxu2 }
 0x1bc   : > { %v2287_v17 = vadd.f32 %v2257_v49, %v2017_v7 }
 0x1bd   : > { %v2387_v24 = vpop.f32.mrf.mxu0 }
 0x1be   : > { %v2550_v14 = vadd.f32 %v2387_v24, %v2280_v51 }
 0x1c0   : > { %v2565_v59 = vadd.f32 %v2563_v19, %v2550_v14 }
 0x1c1   : > { %v2447_v50 = vpop.f32.mrf.mxu3 }
 0x1c2   : > { %v2553_v15 = vadd.f32 %v2447_v50, %v2283_v0 }
 0x1c3   : > { %v2407_v3 = vpop.f32.mrf.mxu1 }
 0x1c4   : > { %v2551_v18 = vadd.f32 %v2407_v3, %v2281_v52  ;;  %v2568_v58 = vadd.f32 %v2563_v19, %v2553_v15 }
 0x1c6   : > { %v2566_v54 = vadd.f32 %v2563_v19, %v2551_v18  ;;  %v2583_v20 = vrot.slane %v2568_v58, 4 }
 0x1c8   : > { %v2582_v62 = vrot.slane %v2566_v54, 4 }
 0x1c9   : > { %v2427_v4 = vpop.f32.mrf.mxu2 }
 0x1ca   : > { %v2586_v9 = vsel %vm268_vm1, %v2565_v59, %v2582_v62  ;;  %v2552_v10 = vadd.f32 %v2427_v4, %v2282_v57 }
 0x1cb   : > { %2594 = vst [vmem:[%s3511_s28] sm:$0xff] %v2586_v9  ;;  %v2527_v61 = vpop.f32.mrf.mxu3  ;;  %v2467_v12 = vpop.f32.mrf.mxu0 }
 0x1cc   : > { %v2567_v21 = vadd.f32 %v2563_v19, %v2552_v10  ;;  %v2557_v30 = vadd.f32 %v2527_v61, %v2287_v17  ;;  %v2554_v31 = vadd.f32 %v2467_v12, %v2284_v60 }
 0x1cd   : > { %v2487_v26 = vpop.f32.mrf.mxu1 }
 0x1ce   : > { %v2587_v28 = vsel %vm268_vm1, %v2567_v21, %v2583_v20  ;;  %v2555_v32 = vadd.f32 %v2487_v26, %v2285_v5  ;;  %v2572_v40 = vadd.f32 %v2563_v19, %v2557_v30  ;;  %v2569_v11 = vadd.f32 %v2563_v19, %v2554_v31 }
 0x1cf   : > { %2595 = vst [vmem:[%s3511_s28 + $0x8] sm:$0xff] %v2587_v28 }
 0x1d0   : > { %v2570_v37 = vadd.f32 %v2563_v19, %v2555_v32  ;;  %v2585_v38 = vrot.slane %v2572_v40, 4 }
 0x1d2   : > { %v2584_v22 = vrot.slane %v2570_v37, 4 }
 0x1d3   : > { %v2507_v8 = vpop.f32.mrf.mxu2  ;;  %v2547_v29 = vpop.f32.mrf.mxu0 }
 0x1d4   : > { %v2588_v2 = vsel %vm268_vm1, %v2569_v11, %v2584_v22  ;;  %v2556_v41 = vadd.f32 %v2507_v8, %v2286_v39  ;;  %v2558_v42 = vadd.f32 %v2547_v29, %v2288_v27 }
 0x1d5   : > { %2596 = vst [vmem:[%s3511_s28 + $0x10] sm:$0xff] %v2588_v2 }
 0x1d6   : > { %v2571_v45 = vadd.f32 %v2563_v19, %v2556_v41  ;;  %v2573_v46 = vadd.f32 %v2563_v19, %v2558_v42 }
 0x1d8   : > { %v2589_v36 = vsel %vm268_vm1, %v2571_v45, %v2585_v38  ;;  %2599 = vst.msk [vmem:[%s3511_s28 + $0x20] sm:$0xf] %vm2598_vm10, %v2573_v46 }
 0x1d9   : > { %2597 = vst [vmem:[%s3511_s28 + $0x18] sm:$0xff] %v2589_v36 }
 0x1da PF: > { %s13_s14 = sadd.s32 1, %s2929_s14   ;;  %s3539_s12 = smov %s2925_s13 }
 0x1db   : > { %p10_p5 = scmp.ge.s32.totalorder %s13_s14, 4   ;;  %s3540_s13 = smov %s3542_s15 }
 0x1dd   :  { %12 = sbr.rel (!%p10_p5) target bundleno = 2 (0x2), region = 97 }

</bundles_post_ra>
